<compile_context>
chip_gen: v6e
topology: v6e:2x2x1
jax: 0.10.0
libtpu: 0.0.40
codegen_flags: <defaults>
</compile_context>

<pallas_src>
import functools

import jax
import jax.numpy as jnp
from jax import lax
from jax.experimental import pallas as pl
from jax.experimental.pallas import tpu as pltpu


# ------------------------------- Pallas kernel -------------------------------

def _rcab_kernel(inv_hw, x_ref, wc1_ref, b1_ref, wc2_ref, b2_ref,
                 wd_ref, bd_ref, wu_ref, bu_ref, pool_ref, bcast_ref,
                 out_ref):
    """Fully fused RCAB for a block of NB images, lane-dense (NB, H, W*C)."""
    x3 = x_ref[...]                                  # (NB, H, W*C) f32
    nb, h, wc = x3.shape
    m = nb * h
    x2 = x3.reshape(m, wc)                           # fold batch into MXU M dim

    # Per-image first/last row masks: zero the rows that wrap across image
    # boundaries after the roll (== SAME zero padding along H).
    hpos = lax.broadcasted_iota(jnp.int32, (nb, h, wc), 1).reshape(m, wc)
    not_first = hpos != 0
    not_last = hpos != (h - 1)

    def conv3x3(a2, wcat_ref, brow_ref):
        # +/-1 row shift on the XLU (roll) + boundary zeroing; no shift matmuls.
        up = jnp.where(not_first, pltpu.roll(a2, shift=1, axis=0), 0.0)     # a[h-1]
        dn = jnp.where(not_last, pltpu.roll(a2, shift=m - 1, axis=0), 0.0)  # a[h+1]
        # One fused MXU dot: (M, 3*W*C) @ (3*W*C, W*C), bf16 operands,
        # f32 accumulation.  kx taps, input channels and W zero-padding are all
        # folded into the banded weight matrix wrapper-side.
        lhs = jnp.concatenate([up.astype(jnp.bfloat16),
                               a2.astype(jnp.bfloat16),
                               dn.astype(jnp.bfloat16)], axis=1)
        acc = jnp.dot(lhs, wcat_ref[...], preferred_element_type=jnp.float32)
        return acc + brow_ref[...]                   # bias tiled over W lanes

    # conv -> ReLU -> conv ; r stays resident on-chip.
    r2 = jnp.maximum(conv3x3(x2, wc1_ref, b1_ref), 0.0)
    r2 = conv3x3(r2, wc2_ref, b2_ref)
    r3 = r2.reshape(nb, h, wc)

    # Channel attention, batched over NB (small dots kept in f32 for accuracy):
    # global avg pool -> 1x1 -> ReLU -> 1x1 -> sigmoid.
    s = jnp.sum(r3, axis=1)                                             # (NB, W*C)
    y = jnp.dot(s, pool_ref[...], preferred_element_type=jnp.float32) * inv_hw
    y = jnp.maximum(
        jnp.dot(y, wd_ref[...], preferred_element_type=jnp.float32) + bd_ref[...],
        0.0)
    y = jax.nn.sigmoid(
        jnp.dot(y, wu_ref[...], preferred_element_type=jnp.float32) + bu_ref[...])
    scale = jnp.dot(y, bcast_ref[...], preferred_element_type=jnp.float32)  # (NB, W*C)

    # CA scaling + RCAB residual, one lane-dense store.
    out_ref[...] = r3 * scale[:, None, :] + x3


# ------------------------------- JAX wrapper ---------------------------------

def _banded_conv_weights(w, width):
    """(3, 3, C, Co) HWIO -> (3, W*C, W*Co) banded matrices.

    M[ky, w_in*C + ci, w_out*Co + co] = w[ky, kx, ci, co] where
    kx = w_in - w_out + 1 (zero where the tap falls outside 0..2, which also
    implements the zero padding along W)."""
    kh, kw, cin, cout = w.shape
    kx = jnp.arange(kw)[:, None, None]
    w_in = jnp.arange(width)[None, :, None]
    w_out = jnp.arange(width)[None, None, :]
    sel = (w_in == w_out + kx - 1).astype(w.dtype)            # (3, W, W)
    m = jnp.einsum("xab,yxio->yaibo", sel, w)                 # (3, W, C, W, Co)
    return m.reshape(kh, width * cin, width * cout)


def _pick_batch_block(n, h):
    """Batch images per grid step: target ~128 MXU LHS rows per weight load,
    only splitting into >=2 grid steps (for v7x's two TensorCores) when each
    step still keeps >=128 rows."""
    rows_target = 128
    nb = max(1, min(n, max(1, rows_target // h)))
    if nb == n and n >= 2 and n * h >= 2 * rows_target:
        nb = -(-n // 2)                                       # two batch blocks
    return nb


@jax.jit
def rcab_forward(x, p):
    n, h, w, c = x.shape
    cr = p["wd"].shape[1]
    wc = w * c

    nb = _pick_batch_block(n, h)
    n_pad = -(-n // nb) * nb

    # Lane-dense activations and layout-plumbed parameters (all wrapper-side).
    x2 = x.reshape(n, h, wc)
    if n_pad != n:
        x2 = jnp.pad(x2, ((0, n_pad - n), (0, 0), (0, 0)))

    # Banded conv weights stacked to (3*W*C, W*C) and cast to bf16 (MXU-native).
    wcat1 = _banded_conv_weights(p["w1"], w).reshape(3 * wc, wc).astype(jnp.bfloat16)
    wcat2 = _banded_conv_weights(p["w2"], w).reshape(3 * wc, wc).astype(jnp.bfloat16)
    b1 = jnp.tile(p["b1"], (w,)).reshape(1, wc)               # bias tiled over W
    b2 = jnp.tile(p["b2"], (w,)).reshape(1, wc)
    pool = jnp.tile(jnp.eye(c, dtype=jnp.float32), (w, 1))    # (W*C, C) pooling
    bcast = pool.T                                            # (C, W*C) broadcast
    wd = p["wd"]
    bd = p["bd"].reshape(1, cr)
    wu = p["wu"]
    bu = p["bu"].reshape(1, c)

    # Constant params: index map is constant across the grid, so they are
    # DMA'd once and stay VMEM-resident.  (pl.Buffered(1) would halve their
    # double-buffer VMEM; irrelevant at W*C = 256, revisit at larger widths.)
    def const_spec(shape):
        return pl.BlockSpec(shape, lambda i, _s=shape: (0,) * len(_s))

    act_spec = pl.BlockSpec((nb, h, wc), lambda i: (i, 0, 0))

    out = pl.pallas_call(
        functools.partial(_rcab_kernel, 1.0 / float(h * w)),
        out_shape=jax.ShapeDtypeStruct((n_pad, h, wc), jnp.float32),
        grid=(n_pad // nb,),
        in_specs=[act_spec,
                  const_spec((3 * wc, wc)), const_spec((1, wc)),
                  const_spec((3 * wc, wc)), const_spec((1, wc)),
                  const_spec((c, cr)), const_spec((1, cr)),
                  const_spec((cr, c)), const_spec((1, c)),
                  const_spec((wc, c)), const_spec((c, wc))],
        out_specs=act_spec,
        compiler_params=pltpu.CompilerParams(
            dimension_semantics=("parallel",)),
    )(x2, wcat1, b1, wcat2, b2, wd, bd, wu, bu, pool, bcast)
    return out[:n].reshape(n, h, w, c)


# ------------------------- Parameters & reference ----------------------------

def init_params(key, n_feat, reduction):
    cr = n_feat // reduction
    ks = jax.random.split(key, 8)
    return {
        "w1": 0.05 * jax.random.normal(ks[0], (3, 3, n_feat, n_feat), jnp.float32),
        "b1": 0.05 * jax.random.normal(ks[1], (n_feat,), jnp.float32),
        "w2": 0.05 * jax.random.normal(ks[2], (3, 3, n_feat, n_feat), jnp.float32),
        "b2": 0.05 * jax.random.normal(ks[3], (n_feat,), jnp.float32),
        "wd": 0.05 * jax.random.normal(ks[4], (n_feat, cr), jnp.float32),
        "bd": 0.05 * jax.random.normal(ks[5], (cr,), jnp.float32),
        "wu": 0.05 * jax.random.normal(ks[6], (cr, n_feat), jnp.float32),
        "bu": 0.05 * jax.random.normal(ks[7], (n_feat,), jnp.float32),
    }


def rcab_reference(x, p):
    def conv(z, w, b):
        y = lax.conv_general_dilated(z, w, (1, 1), "SAME",
                                     dimension_numbers=("NHWC", "HWIO", "NHWC"))
        return y + b.reshape(1, 1, 1, -1)

    r = jnp.maximum(conv(x, p["w1"], p["b1"]), 0.0)
    r = conv(r, p["w2"], p["b2"])
    y = jnp.mean(r, axis=(1, 2))                              # (N, C)
    y = jnp.maximum(y @ p["wd"] + p["bd"], 0.0)
    y = jax.nn.sigmoid(y @ p["wu"] + p["bu"])
    return r * y[:, None, None, :] + x


# ----------------------------------- main -------------------------------------

if __name__ == "__main__":
    N, H, W = 2, 16, 16
    n_feat, reduction = 16, 4

    key = jax.random.PRNGKey(0)
    kx, kp = jax.random.split(key)
    x = jax.random.normal(kx, (N, H, W, n_feat), jnp.float32)
    params = init_params(kp, n_feat, reduction)

    out = jax.block_until_ready(rcab_forward(x, params))
    ref = jax.block_until_ready(rcab_reference(x, params))

    assert out.shape == (N, H, W, n_feat)
    # bf16 conv-matmul operands (f32 accumulation) => looser tolerance than
    # the pure-f32 version; CA path stays f32.
    assert jnp.allclose(out, ref, atol=3e-2, rtol=3e-2), "mismatch vs JAX reference"

    print("KERNEL_OK")
</pallas_src>

<mosaic_0001>
module attributes {stable_mosaic.version = 11 : i64} {
  func.func @_rcab_kernel(%arg0: i32, %arg1: memref<2x16x256xf32, #tpu.memory_space<vmem>>, %arg2: memref<768x256xbf16, #tpu.memory_space<vmem>>, %arg3: memref<1x256xf32, #tpu.memory_space<vmem>>, %arg4: memref<768x256xbf16, #tpu.memory_space<vmem>>, %arg5: memref<1x256xf32, #tpu.memory_space<vmem>>, %arg6: memref<16x4xf32, #tpu.memory_space<vmem>>, %arg7: memref<1x4xf32, #tpu.memory_space<vmem>>, %arg8: memref<4x16xf32, #tpu.memory_space<vmem>>, %arg9: memref<1x16xf32, #tpu.memory_space<vmem>>, %arg10: memref<256x16xf32, #tpu.memory_space<vmem>>, %arg11: memref<16x256xf32, #tpu.memory_space<vmem>>, %arg12: memref<2x16x256xf32, #tpu.memory_space<vmem>>) attributes {dimension_semantics = [#tpu.dimension_semantics<parallel>], iteration_bounds = array<i64: 1>, scalar_prefetch = 0 : i64, scratch_operands = 0 : i64, tpu.core_type = #tpu.core_type<tc>, window_params = [{transform_indices = @transform_0, window_bounds = array<i64: 2, 16, 256>}, {pipeline_mode = #tpu.pipeline_mode<synchronous>, transform_indices = @transform_1, window_bounds = array<i64: 768, 256>}, {pipeline_mode = #tpu.pipeline_mode<synchronous>, transform_indices = @transform_2, window_bounds = array<i64: 1, 256>}, {pipeline_mode = #tpu.pipeline_mode<synchronous>, transform_indices = @transform_3, window_bounds = array<i64: 768, 256>}, {pipeline_mode = #tpu.pipeline_mode<synchronous>, transform_indices = @transform_4, window_bounds = array<i64: 1, 256>}, {pipeline_mode = #tpu.pipeline_mode<synchronous>, transform_indices = @transform_5, window_bounds = array<i64: 16, 4>}, {pipeline_mode = #tpu.pipeline_mode<synchronous>, transform_indices = @transform_6, window_bounds = array<i64: 1, 4>}, {pipeline_mode = #tpu.pipeline_mode<synchronous>, transform_indices = @transform_7, window_bounds = array<i64: 4, 16>}, {pipeline_mode = #tpu.pipeline_mode<synchronous>, transform_indices = @transform_8, window_bounds = array<i64: 1, 16>}, {pipeline_mode = #tpu.pipeline_mode<synchronous>, transform_indices = @transform_9, window_bounds = array<i64: 256, 16>}, {pipeline_mode = #tpu.pipeline_mode<synchronous>, transform_indices = @transform_10, window_bounds = array<i64: 16, 256>}, {transform_indices = @transform_11, window_bounds = array<i64: 2, 16, 256>}]} {
    %c0 = arith.constant 0 : index
    %c0_0 = arith.constant 0 : index
    %c0_1 = arith.constant 0 : index
    %0 = vector.load %arg1[%c0, %c0_0, %c0_1] : memref<2x16x256xf32, #tpu.memory_space<vmem>>, vector<2x16x256xf32>
    %1 = vector.shape_cast %0 : vector<2x16x256xf32> to vector<32x256xf32>
    %2 = tpu.iota {dimensions = array<i32: 1>} : vector<2x16x256xi32>
    %3 = vector.shape_cast %2 : vector<2x16x256xi32> to vector<32x256xi32>
    %c0_i32 = arith.constant 0 : i32
    %4 = vector.broadcast %c0_i32 : i32 to vector<32x256xi32>
    %5 = arith.cmpi ne, %3, %4 : vector<32x256xi32>
    %c15_i32 = arith.constant 15 : i32
    %6 = vector.broadcast %c15_i32 : i32 to vector<32x256xi32>
    %7 = arith.cmpi ne, %3, %6 : vector<32x256xi32>
    %c1_i32 = arith.constant 1 : i32
    %8 = tpu.dynamic_rotate %1 by %c1_i32 dim 0 : vector<32x256xf32>, i32 -> vector<32x256xf32>
    %cst = arith.constant 0.000000e+00 : f32
    %9 = vector.broadcast %cst : f32 to vector<32x256xf32>
    %10 = arith.select %5, %8, %9 : vector<32x256xi1>, vector<32x256xf32>
    %c31_i32 = arith.constant 31 : i32
    %11 = tpu.dynamic_rotate %1 by %c31_i32 dim 0 : vector<32x256xf32>, i32 -> vector<32x256xf32>
    %cst_2 = arith.constant 0.000000e+00 : f32
    %12 = vector.broadcast %cst_2 : f32 to vector<32x256xf32>
    %13 = arith.select %7, %11, %12 : vector<32x256xi1>, vector<32x256xf32>
    %14 = arith.truncf %10 : vector<32x256xf32> to vector<32x256xbf16>
    %15 = arith.truncf %1 : vector<32x256xf32> to vector<32x256xbf16>
    %16 = arith.truncf %13 : vector<32x256xf32> to vector<32x256xbf16>
    %17 = tpu.concatenate %14, %15, %16 in 1 : vector<32x256xbf16>, vector<32x256xbf16>, vector<32x256xbf16> -> vector<32x768xbf16>
    %c0_3 = arith.constant 0 : index
    %c0_4 = arith.constant 0 : index
    %18 = vector.load %arg2[%c0_3, %c0_4] : memref<768x256xbf16, #tpu.memory_space<vmem>>, vector<768x256xbf16>
    %cst_5 = arith.constant dense<0.000000e+00> : vector<32x256xf32>
    %19 = tpu.matmul %17, %18, %cst_5 {dimension_numbers = #tpu.dot_dimension_numbers<[1], [0], [0], [1], [0, 0, 1, 1], [], []>} : vector<32x768xbf16>, vector<768x256xbf16>, vector<32x256xf32> -> vector<32x256xf32>
    %c0_6 = arith.constant 0 : index
    %c0_7 = arith.constant 0 : index
    %20 = vector.load %arg3[%c0_6, %c0_7] : memref<1x256xf32, #tpu.memory_space<vmem>>, vector<1x256xf32>
    %21 = vector.broadcast %20 : vector<1x256xf32> to vector<32x256xf32>
    %22 = arith.addf %19, %21 : vector<32x256xf32>
    %cst_8 = arith.constant 0.000000e+00 : f32
    %23 = vector.broadcast %cst_8 : f32 to vector<32x256xf32>
    %24 = arith.maximumf %22, %23 : vector<32x256xf32>
    %c1_i32_9 = arith.constant 1 : i32
    %25 = tpu.dynamic_rotate %24 by %c1_i32_9 dim 0 : vector<32x256xf32>, i32 -> vector<32x256xf32>
    %cst_10 = arith.constant 0.000000e+00 : f32
    %26 = vector.broadcast %cst_10 : f32 to vector<32x256xf32>
    %27 = arith.select %5, %25, %26 : vector<32x256xi1>, vector<32x256xf32>
    %c31_i32_11 = arith.constant 31 : i32
    %28 = tpu.dynamic_rotate %24 by %c31_i32_11 dim 0 : vector<32x256xf32>, i32 -> vector<32x256xf32>
    %cst_12 = arith.constant 0.000000e+00 : f32
    %29 = vector.broadcast %cst_12 : f32 to vector<32x256xf32>
    %30 = arith.select %7, %28, %29 : vector<32x256xi1>, vector<32x256xf32>
    %31 = arith.truncf %27 : vector<32x256xf32> to vector<32x256xbf16>
    %32 = arith.truncf %24 : vector<32x256xf32> to vector<32x256xbf16>
    %33 = arith.truncf %30 : vector<32x256xf32> to vector<32x256xbf16>
    %34 = tpu.concatenate %31, %32, %33 in 1 : vector<32x256xbf16>, vector<32x256xbf16>, vector<32x256xbf16> -> vector<32x768xbf16>
    %c0_13 = arith.constant 0 : index
    %c0_14 = arith.constant 0 : index
    %35 = vector.load %arg4[%c0_13, %c0_14] : memref<768x256xbf16, #tpu.memory_space<vmem>>, vector<768x256xbf16>
    %cst_15 = arith.constant dense<0.000000e+00> : vector<32x256xf32>
    %36 = tpu.matmul %34, %35, %cst_15 {dimension_numbers = #tpu.dot_dimension_numbers<[1], [0], [0], [1], [0, 0, 1, 1], [], []>} : vector<32x768xbf16>, vector<768x256xbf16>, vector<32x256xf32> -> vector<32x256xf32>
    %c0_16 = arith.constant 0 : index
    %c0_17 = arith.constant 0 : index
    %37 = vector.load %arg5[%c0_16, %c0_17] : memref<1x256xf32, #tpu.memory_space<vmem>>, vector<1x256xf32>
    %38 = vector.broadcast %37 : vector<1x256xf32> to vector<32x256xf32>
    %39 = arith.addf %36, %38 : vector<32x256xf32>
    %40 = vector.shape_cast %39 : vector<32x256xf32> to vector<2x16x256xf32>
    %cst_18 = arith.constant dense<0.000000e+00> : vector<2x256xf32>
    %41 = vector.multi_reduction <add>, %40, %cst_18 [1] : vector<2x16x256xf32> to vector<2x256xf32>
    %c0_19 = arith.constant 0 : index
    %c0_20 = arith.constant 0 : index
    %42 = vector.load %arg10[%c0_19, %c0_20] : memref<256x16xf32, #tpu.memory_space<vmem>>, vector<256x16xf32>
    %cst_21 = arith.constant dense<0.000000e+00> : vector<2x16xf32>
    %43 = tpu.matmul %41, %42, %cst_21 {dimension_numbers = #tpu.dot_dimension_numbers<[1], [0], [0], [1], [0, 0, 1, 1], [], []>} : vector<2x256xf32>, vector<256x16xf32>, vector<2x16xf32> -> vector<2x16xf32>
    %cst_22 = arith.constant 3.906250e-03 : f32
    %44 = vector.broadcast %cst_22 : f32 to vector<2x16xf32>
    %45 = arith.mulf %43, %44 : vector<2x16xf32>
    %c0_23 = arith.constant 0 : index
    %c0_24 = arith.constant 0 : index
    %46 = vector.load %arg6[%c0_23, %c0_24] : memref<16x4xf32, #tpu.memory_space<vmem>>, vector<16x4xf32>
    %cst_25 = arith.constant dense<0.000000e+00> : vector<2x4xf32>
    %47 = tpu.matmul %45, %46, %cst_25 {dimension_numbers = #tpu.dot_dimension_numbers<[1], [0], [0], [1], [0, 0, 1, 1], [], []>} : vector<2x16xf32>, vector<16x4xf32>, vector<2x4xf32> -> vector<2x4xf32>
    %c0_26 = arith.constant 0 : index
    %c0_27 = arith.constant 0 : index
    %48 = vector.load %arg7[%c0_26, %c0_27] : memref<1x4xf32, #tpu.memory_space<vmem>>, vector<1x4xf32>
    %49 = vector.broadcast %48 : vector<1x4xf32> to vector<2x4xf32>
    %50 = arith.addf %47, %49 : vector<2x4xf32>
    %cst_28 = arith.constant 0.000000e+00 : f32
    %51 = vector.broadcast %cst_28 : f32 to vector<2x4xf32>
    %52 = arith.maximumf %50, %51 : vector<2x4xf32>
    %c0_29 = arith.constant 0 : index
    %c0_30 = arith.constant 0 : index
    %53 = vector.load %arg8[%c0_29, %c0_30] : memref<4x16xf32, #tpu.memory_space<vmem>>, vector<4x16xf32>
    %cst_31 = arith.constant dense<0.000000e+00> : vector<2x16xf32>
    %54 = tpu.matmul %52, %53, %cst_31 {dimension_numbers = #tpu.dot_dimension_numbers<[1], [0], [0], [1], [0, 0, 1, 1], [], []>} : vector<2x4xf32>, vector<4x16xf32>, vector<2x16xf32> -> vector<2x16xf32>
    %c0_32 = arith.constant 0 : index
    %c0_33 = arith.constant 0 : index
    %55 = vector.load %arg9[%c0_32, %c0_33] : memref<1x16xf32, #tpu.memory_space<vmem>>, vector<1x16xf32>
    %56 = vector.broadcast %55 : vector<1x16xf32> to vector<2x16xf32>
    %57 = arith.addf %54, %56 : vector<2x16xf32>
    %58 = arith.negf %57 : vector<2x16xf32>
    %59 = math.exp %58 : vector<2x16xf32>
    %cst_34 = arith.constant 1.000000e+00 : f32
    %60 = vector.broadcast %cst_34 : f32 to vector<2x16xf32>
    %61 = arith.addf %60, %59 : vector<2x16xf32>
    %62 = arith.divf %60, %61 : vector<2x16xf32>
    %c0_35 = arith.constant 0 : index
    %c0_36 = arith.constant 0 : index
    %63 = vector.load %arg11[%c0_35, %c0_36] : memref<16x256xf32, #tpu.memory_space<vmem>>, vector<16x256xf32>
    %cst_37 = arith.constant dense<0.000000e+00> : vector<2x256xf32>
    %64 = tpu.matmul %62, %63, %cst_37 {dimension_numbers = #tpu.dot_dimension_numbers<[1], [0], [0], [1], [0, 0, 1, 1], [], []>} : vector<2x16xf32>, vector<16x256xf32>, vector<2x256xf32> -> vector<2x256xf32>
    %65 = vector.shape_cast %64 : vector<2x256xf32> to vector<2x1x256xf32>
    %66 = vector.broadcast %65 : vector<2x1x256xf32> to vector<2x16x256xf32>
    %67 = arith.mulf %40, %66 : vector<2x16x256xf32>
    %68 = arith.addf %67, %0 : vector<2x16x256xf32>
    %c0_38 = arith.constant 0 : index
    %c0_39 = arith.constant 0 : index
    %c0_40 = arith.constant 0 : index
    %69 = vector.load %arg12[%c0_38, %c0_39, %c0_40] : memref<2x16x256xf32, #tpu.memory_space<vmem>>, vector<2x16x256xf32>
    tpu.vector_store %arg12[%c0_38, %c0_39, %c0_40], %68 {strides = array<i32>} : memref<2x16x256xf32, #tpu.memory_space<vmem>>, vector<2x16x256xf32>,
    return
  }
  func.func @transform_0(%arg0: i32) -> (i32, i32, i32) {
    %c0_i32 = arith.constant 0 : i32
    %c0_i32_0 = arith.constant 0 : i32
    %c0_i32_1 = arith.constant 0 : i32
    return %arg0, %c0_i32, %c0_i32_0 : i32, i32, i32
  }
  func.func @transform_1(%arg0: i32) -> (i32, i32) {
    %c0_i32 = arith.constant 0 : i32
    %c0_i32_0 = arith.constant 0 : i32
    %c0_i32_1 = arith.constant 0 : i32
    return %c0_i32, %c0_i32_0 : i32, i32
  }
  func.func @transform_2(%arg0: i32) -> (i32, i32) {
    %c0_i32 = arith.constant 0 : i32
    %c0_i32_0 = arith.constant 0 : i32
    %c0_i32_1 = arith.constant 0 : i32
    return %c0_i32, %c0_i32_0 : i32, i32
  }
  func.func @transform_3(%arg0: i32) -> (i32, i32) {
    %c0_i32 = arith.constant 0 : i32
    %c0_i32_0 = arith.constant 0 : i32
    %c0_i32_1 = arith.constant 0 : i32
    return %c0_i32, %c0_i32_0 : i32, i32
  }
  func.func @transform_4(%arg0: i32) -> (i32, i32) {
    %c0_i32 = arith.constant 0 : i32
    %c0_i32_0 = arith.constant 0 : i32
    %c0_i32_1 = arith.constant 0 : i32
    return %c0_i32, %c0_i32_0 : i32, i32
  }
  func.func @transform_5(%arg0: i32) -> (i32, i32) {
    %c0_i32 = arith.constant 0 : i32
    %c0_i32_0 = arith.constant 0 : i32
    %c0_i32_1 = arith.constant 0 : i32
    return %c0_i32, %c0_i32_0 : i32, i32
  }
  func.func @transform_6(%arg0: i32) -> (i32, i32) {
    %c0_i32 = arith.constant 0 : i32
    %c0_i32_0 = arith.constant 0 : i32
    %c0_i32_1 = arith.constant 0 : i32
    return %c0_i32, %c0_i32_0 : i32, i32
  }
  func.func @transform_7(%arg0: i32) -> (i32, i32) {
    %c0_i32 = arith.constant 0 : i32
    %c0_i32_0 = arith.constant 0 : i32
    %c0_i32_1 = arith.constant 0 : i32
    return %c0_i32, %c0_i32_0 : i32, i32
  }
  func.func @transform_8(%arg0: i32) -> (i32, i32) {
    %c0_i32 = arith.constant 0 : i32
    %c0_i32_0 = arith.constant 0 : i32
    %c0_i32_1 = arith.constant 0 : i32
    return %c0_i32, %c0_i32_0 : i32, i32
  }
  func.func @transform_9(%arg0: i32) -> (i32, i32) {
    %c0_i32 = arith.constant 0 : i32
    %c0_i32_0 = arith.constant 0 : i32
    %c0_i32_1 = arith.constant 0 : i32
    return %c0_i32, %c0_i32_0 : i32, i32
  }
  func.func @transform_10(%arg0: i32) -> (i32, i32) {
    %c0_i32 = arith.constant 0 : i32
    %c0_i32_0 = arith.constant 0 : i32
    %c0_i32_1 = arith.constant 0 : i32
    return %c0_i32, %c0_i32_0 : i32, i32
  }
  func.func @transform_11(%arg0: i32) -> (i32, i32, i32) {
    %c0_i32 = arith.constant 0 : i32
    %c0_i32_0 = arith.constant 0 : i32
    %c0_i32_1 = arith.constant 0 : i32
    return %arg0, %c0_i32, %c0_i32_0 : i32, i32, i32
  }
}

</mosaic_0001>

<bundles_post_ra>
// kernel: tile.29
= control target key start
LH: loop header
LB: loop body
LE: loop exit
PB: predicated region body
PF: predicated region fallthrough
CT: control target
= control target key end

     0   :  { %vm65_vm0 = vcmask 1043458   ;;  %s105_s6 = smov 3  ;;  %vm70_vm1 = vcmask 1045508   ;;  %vm75_vm2 = vcmask 1047558   ;;  %s108_s9 = smov 12  ;;  %vm4_vm3 = vcmask 1047556   ;;  %s1498_s0 = inlined_call_operand.vmem [shape: f32[16,16,16], index: 0, kind: input, shape index: {}]   ;;  %s1499_s1 = inlined_call_operand.vmem [shape: f32[256,16], index: 1, kind: output, shape index: {}]  }
   0x1   :  { %v726_v0 = vld [vmem:[%s1498_s0 + $0x87] ss:$16 sm:%s105_s6]   ;;  %s113_s10 = smov 48  ;;  %s118_s15 = smov 192  ;;  %vm6_vm4 = vcmask 130048   ;;  %vm79_vm5 = vcmask 1048448  }
   0x2   :  { %v727_v1 = vld [vmem:[%s1498_s0 + $0x87] ss:$16 sm:%s108_s9]   ;;  %s60_s16 = smov 3  ;;  %s63_s21 = smov 12  ;;  %vm170_vm6 = vcmask 917248   ;;  %vm261_vm7 = vcmask 786048  }
   0x3   :  { %v728_v2 = vld [vmem:[%s1498_s0 + $0x87] ss:$16 sm:%s113_s10]   ;;  %v111_v3 = vsel %vm65_vm0, %v727_v1, %v726_v0  ;;  %s68_s22 = smov 48  ;;  %s73_s27 = smov 192  ;;  %vm352_vm8 = vcmask 654848   ;;  %vm443_vm9 = vcmask 523648  }
   0x4   :  { %v729_v4 = vld [vmem:[%s1498_s0 + $0x87] ss:$16 sm:%s118_s15]   ;;  %v116_v6 = vsel %vm70_vm1, %v728_v2, %v111_v3  ;;  %s128_s28 = smov 3  ;;  %s131_s4 = smov 12  ;;  %vm534_vm10 = vcmask 392448   ;;  %vm625_vm11 = vcmask 261248  }
   0x5   :  { %v717_v5 = vld [vmem:[%s1498_s0 + $0x7] ss:$16 sm:%s60_s16]   ;;  %v121_v9 = vsel %vm75_vm2, %v729_v4, %v116_v6  ;;  %v731_v12 = vld [vmem:[%s1498_s0 + $0x8f] ss:$16 sm:%s128_s28]   ;;  %s136_s5 = smov 48  ;;  %s857_s6 = smov 112  }
   0x6   :  { %v718_v7 = vld [vmem:[%s1498_s0 + $0x7] ss:$16 sm:%s63_s21]   ;;  %122 = vrot.lane.b32.xlu1 %v121_v9, %s857_s6  ;;  %s141_s9 = smov 192  ;;  %s82_s10 = smov 3 }
   0x7   :  { %v719_v8 = vld [vmem:[%s1498_s0 + $0x7] ss:$16 sm:%s68_s22]   ;;  %v66_v10 = vsel %vm65_vm0, %v718_v7, %v717_v5  ;;  %v732_v14 = vld [vmem:[%s1498_s0 + $0x8f] ss:$16 sm:%s131_s4]   ;;  %s85_s15 = smov 12  ;;  %s90_s16 = smov 48 }
   0x8   :  { %v720_v11 = vld [vmem:[%s1498_s0 + $0x7] ss:$16 sm:%s73_s27]   ;;  %v71_v13 = vsel %vm70_vm1, %v719_v8, %v66_v10  ;;  %v134_v16 = vsel %vm65_vm0, %v732_v14, %v731_v12  ;;  %v733_v17 = vld [vmem:[%s1498_s0 + $0x8f] ss:$16 sm:%s136_s5]   ;;  %s95_s19 = smov 192  ;;  %s173_s24 = smov 3 }
   0x9   :  { %v76_v15 = vsel %vm75_vm2, %v720_v11, %v71_v13  ;;  %v734_v18 = vld [vmem:[%s1498_s0 + $0x8f] ss:$16 sm:%s141_s9]   ;;  %v139_v19 = vsel %vm70_vm1, %v733_v17, %v134_v16  ;;  %s176_s25 = smov 12  ;;  %s181_s28 = smov 48  ;;  %v740_v27 = vld [vmem:[%s1498_s0 + $0xe] ss:$16 sm:%s173_s24]  }
   0xa   :  { %77 = vrot.lane.b32.xlu0 %v76_v15, %s857_s6  ;;  %v721_v20 = vld [vmem:[%s1498_s0 + $0xf] ss:$16 sm:%s82_s10]   ;;  %v144_v21 = vsel %vm75_vm2, %v734_v18, %v139_v19  ;;  %s186_s29 = smov 192  ;;  %s151_s5 = smov 3 }
   0xb   :  { %v722_v22 = vld [vmem:[%s1498_s0 + $0xf] ss:$16 sm:%s85_s15]   ;;  %145 = vrot.lane.b32.xlu1 %v144_v21, %s857_s6  ;;  %s154_s7 = smov 12  ;;  %s159_s12 = smov 48 }
   0xc   :  { %v723_v23 = vld [vmem:[%s1498_s0 + $0xf] ss:$16 sm:%s90_s16]   ;;  %v88_v24 = vsel %vm65_vm0, %v722_v22, %v721_v20  ;;  %v741_v28 = vld [vmem:[%s1498_s0 + $0xe] ss:$16 sm:%s176_s25]   ;;  %s164_s13 = smov 192  ;;  %s219_s15 = smov 3 }
   0xd   :  { %v724_v25 = vld [vmem:[%s1498_s0 + $0xf] ss:$16 sm:%s95_s19]   ;;  %v93_v26 = vsel %vm70_vm1, %v723_v23, %v88_v24  ;;  %v179_v30 = vsel %vm65_vm0, %v741_v28, %v740_v27  ;;  %v742_v31 = vld [vmem:[%s1498_s0 + $0xe] ss:$16 sm:%s181_s28]   ;;  %s222_s16 = smov 12  ;;  %s227_s21 = smov 48 }
   0xe   :  { %v98_v29 = vsel %vm75_vm2, %v724_v25, %v93_v26  ;;  %v743_v32 = vld [vmem:[%s1498_s0 + $0xe] ss:$16 sm:%s186_s29]   ;;  %v184_v33 = vsel %vm70_vm1, %v742_v31, %v179_v30  ;;  %v736_v34 = vld [vmem:[%s1498_s0 + $0x6] ss:$16 sm:%s151_s5]   ;;  %s232_s22 = smov 192  ;;  %s858_s23 = smov 96  }
   0xf   :  { %99 = vrot.lane.b32.xlu0 %v98_v29, %s857_s6  ;;  %v189_v35 = vsel %vm75_vm2, %v743_v32, %v184_v33  ;;  %v737_v36 = vld [vmem:[%s1498_s0 + $0x6] ss:$16 sm:%s154_s7]   ;;  %s196_s26 = smov 3  ;;  %s199_s2 = smov 12 }
  0x10   :  { %v738_v37 = vld [vmem:[%s1498_s0 + $0x6] ss:$16 sm:%s159_s12]   ;;  %190 = vrot.lane.b32.xlu1 %v189_v35, %s858_s23  ;;  %v157_v38 = vsel %vm65_vm0, %v737_v36, %v736_v34  ;;  %s204_s3 = smov 48  ;;  %s209_s9 = smov 192 }
  0x11   :  { %v739_v39 = vld [vmem:[%s1498_s0 + $0x6] ss:$16 sm:%s164_s13]   ;;  %v162_v40 = vsel %vm70_vm1, %v738_v37, %v157_v38  ;;  %v750_v41 = vld [vmem:[%s1498_s0 + $0x8e] ss:$16 sm:%s219_s15]   ;;  %s264_s12 = smov 3  ;;  %s267_s13 = smov 12 }
  0x12   :  { %v751_v42 = vld [vmem:[%s1498_s0 + $0x8e] ss:$16 sm:%s222_s16]   ;;  %v167_v43 = vsel %vm75_vm2, %v739_v39, %v162_v40  ;;  %v745_v48 = vld [vmem:[%s1498_s0 + $0x86] ss:$16 sm:%s196_s26]   ;;  %s272_s17 = smov 48  ;;  %s277_s18 = smov 192 }
  0x13   :  { %v225_v44 = vsel %vm65_vm0, %v751_v42, %v750_v41  ;;  %v752_v45 = vld [vmem:[%s1498_s0 + $0x8e] ss:$16 sm:%s227_s21]   ;;  %168 = vrot.lane.b32.xlu0 %v167_v43, %s858_s23  ;;  %s242_s21 = smov 3  ;;  %s245_s27 = smov 12 }
  0x14   :  { %v753_v46 = vld [vmem:[%s1498_s0 + $0x8e] ss:$16 sm:%s232_s22]   ;;  %v230_v47 = vsel %vm70_vm1, %v752_v45, %v225_v44  ;;  %v746_v50 = vld [vmem:[%s1498_s0 + $0x86] ss:$16 sm:%s199_s2]   ;;  %s250_s28 = smov 48  ;;  %s255_s4 = smov 192 }
  0x15   :  { %v235_v49 = vsel %vm75_vm2, %v753_v46, %v230_v47  ;;  %v747_v51 = vld [vmem:[%s1498_s0 + $0x86] ss:$16 sm:%s204_s3]   ;;  %v202_v52 = vsel %vm65_vm0, %v746_v50, %v745_v48  ;;  %v759_v55 = vld [vmem:[%s1498_s0 + $0xd] ss:$16 sm:%s264_s12]   ;;  %s310_s7 = smov 3  ;;  %s313_s8 = smov 12 }
  0x16   :  { %236 = vrot.lane.b32.xlu1 %v235_v49, %s858_s23  ;;  %v748_v53 = vld [vmem:[%s1498_s0 + $0x86] ss:$16 sm:%s209_s9]   ;;  %v207_v54 = vsel %vm70_vm1, %v747_v51, %v202_v52  ;;  %s323_s6 = smov 192  ;;  %s859_s14 = smov 80  }
  0x17   :  { %v760_v56 = vld [vmem:[%s1498_s0 + $0xd] ss:$16 sm:%s267_s13]   ;;  %v212_v57 = vsel %vm75_vm2, %v748_v53, %v207_v54  ;;  %v755_v62 = vld [vmem:[%s1498_s0 + $0x5] ss:$16 sm:%s242_s21]   ;;  %s318_s13 = smov 48  ;;  %s290_s22 = smov 12 }
  0x18   :  { %v270_v58 = vsel %vm65_vm0, %v760_v56, %v759_v55  ;;  %v761_v59 = vld [vmem:[%s1498_s0 + $0xd] ss:$16 sm:%s272_s17]   ;;  %213 = vrot.lane.b32.xlu0 %v212_v57, %s858_s23  ;;  %s287_s17 = smov 3  ;;  %s295_s24 = smov 48 }
  0x19   :  { %v762_v60 = vld [vmem:[%s1498_s0 + $0xd] ss:$16 sm:%s277_s18]   ;;  %v275_v61 = vsel %vm70_vm1, %v761_v59, %v270_v58  ;;  %v756_v0 = vld [vmem:[%s1498_s0 + $0x5] ss:$16 sm:%s245_s27]   ;;  %s300_s29 = smov 192  ;;  %s355_s3 = smov 3 }
  0x1a   :  { %v280_v63 = vsel %vm75_vm2, %v762_v60, %v275_v61  ;;  %v757_v1 = vld [vmem:[%s1498_s0 + $0x5] ss:$16 sm:%s250_s28]   ;;  %v248_v2 = vsel %vm65_vm0, %v756_v0, %v755_v62  ;;  %v769_v5 = vld [vmem:[%s1498_s0 + $0x8d] ss:$16 sm:%s310_s7]   ;;  %s363_s9 = smov 48  ;;  %s368_s10 = smov 192 }
  0x1b   :  { %281 = vrot.lane.b32.xlu1 %v280_v63, %s859_s14  ;;  %v758_v3 = vld [vmem:[%s1498_s0 + $0x5] ss:$16 sm:%s255_s4]   ;;  %v253_v4 = vsel %vm70_vm1, %v757_v1, %v248_v2  ;;  %s358_s4 = smov 12  ;;  %s336_s18 = smov 12 }
  0x1c   :  { %v770_v6 = vld [vmem:[%s1498_s0 + $0x8d] ss:$16 sm:%s313_s8]   ;;  %v258_v7 = vsel %vm75_vm2, %v758_v3, %v253_v4  ;;  %v764_v12 = vld [vmem:[%s1498_s0 + $0x85] ss:$16 sm:%s287_s17]   ;;  %s341_s19 = smov 48  ;;  %s346_s25 = smov 192 }
  0x1d   :  { %v316_v8 = vsel %vm65_vm0, %v770_v6, %v769_v5  ;;  %v771_v9 = vld [vmem:[%s1498_s0 + $0x8d] ss:$16 sm:%s318_s13]   ;;  %259 = vrot.lane.b32.xlu0 %v258_v7, %s859_s14  ;;  %s333_s13 = smov 3  ;;  %s401_s27 = smov 3 }
  0x1e   :  { %v772_v10 = vld [vmem:[%s1498_s0 + $0x8d] ss:$16 sm:%s323_s6]   ;;  %v321_v11 = vsel %vm70_vm1, %v771_v9, %v316_v8  ;;  %v765_v14 = vld [vmem:[%s1498_s0 + $0x85] ss:$16 sm:%s290_s22]   ;;  %s404_s28 = smov 12  ;;  %s414_s23 = smov 192 }
  0x1f   :  { %v326_v13 = vsel %vm75_vm2, %v772_v10, %v321_v11  ;;  %v766_v15 = vld [vmem:[%s1498_s0 + $0x85] ss:$16 sm:%s295_s24]   ;;  %v293_v16 = vsel %vm65_vm0, %v765_v14, %v764_v12  ;;  %v778_v19 = vld [vmem:[%s1498_s0 + $0xc] ss:$16 sm:%s355_s3]   ;;  %s860_s5 = smov 64   ;;  %s381_s6 = smov 12 }
  0x20   :  { %327 = vrot.lane.b32.xlu1 %v326_v13, %s859_s14  ;;  %v767_v17 = vld [vmem:[%s1498_s0 + $0x85] ss:$16 sm:%s300_s29]   ;;  %v298_v18 = vsel %vm70_vm1, %v766_v15, %v293_v16  ;;  %s386_s15 = smov 48  ;;  %s391_s20 = smov 192 }
  0x21   :  { %v779_v20 = vld [vmem:[%s1498_s0 + $0xc] ss:$16 sm:%s358_s4]   ;;  %v303_v21 = vsel %vm75_vm2, %v767_v17, %v298_v18  ;;  %v774_v26 = vld [vmem:[%s1498_s0 + $0x4] ss:$16 sm:%s333_s13]   ;;  %s409_s4 = smov 48  ;;  %s446_s24 = smov 3 }
  0x22   :  { %v361_v22 = vsel %vm65_vm0, %v779_v20, %v778_v19  ;;  %v780_v23 = vld [vmem:[%s1498_s0 + $0xc] ss:$16 sm:%s363_s9]   ;;  %304 = vrot.lane.b32.xlu0 %v303_v21, %s859_s14  ;;  %s378_s9 = smov 3  ;;  %s454_s29 = smov 48 }
  0x23   :  { %v781_v24 = vld [vmem:[%s1498_s0 + $0xc] ss:$16 sm:%s368_s10]   ;;  %v366_v25 = vsel %vm70_vm1, %v780_v23, %v361_v22  ;;  %v775_v28 = vld [vmem:[%s1498_s0 + $0x4] ss:$16 sm:%s336_s18]   ;;  %s459_s30 = smov 192  ;;  %s427_s10 = smov 12 }
  0x24   :  { %v371_v27 = vsel %vm75_vm2, %v781_v24, %v366_v25  ;;  %v776_v29 = vld [vmem:[%s1498_s0 + $0x4] ss:$16 sm:%s341_s19]   ;;  %v339_v30 = vsel %vm65_vm0, %v775_v28, %v774_v26  ;;  %v788_v33 = vld [vmem:[%s1498_s0 + $0x8c] ss:$16 sm:%s401_s27]   ;;  %s432_s11 = smov 48  ;;  %s437_s16 = smov 192 }
  0x25   :  { %372 = vrot.lane.b32.xlu1 %v371_v27, %s860_s5  ;;  %v777_v31 = vld [vmem:[%s1498_s0 + $0x4] ss:$16 sm:%s346_s25]   ;;  %v344_v32 = vsel %vm70_vm1, %v776_v29, %v339_v30  ;;  %s449_s25 = smov 12  ;;  %s492_s18 = smov 3 }
  0x26   :  { %v789_v34 = vld [vmem:[%s1498_s0 + $0x8c] ss:$16 sm:%s404_s28]   ;;  %v349_v35 = vsel %vm75_vm2, %v777_v31, %v344_v32  ;;  %v783_v40 = vld [vmem:[%s1498_s0 + $0x84] ss:$16 sm:%s378_s9]   ;;  %s495_s19 = smov 12  ;;  %s505_s14 = smov 192 }
  0x27   :  { %v407_v36 = vsel %vm65_vm0, %v789_v34, %v788_v33  ;;  %v790_v37 = vld [vmem:[%s1498_s0 + $0x8c] ss:$16 sm:%s409_s4]   ;;  %350 = vrot.lane.b32.xlu0 %v349_v35, %s860_s5  ;;  %s424_s4 = smov 3  ;;  %s861_s26 = smov 48  }
  0x28   :  { %v791_v38 = vld [vmem:[%s1498_s0 + $0x8c] ss:$16 sm:%s414_s23]   ;;  %v412_v39 = vsel %vm70_vm1, %v790_v37, %v407_v36  ;;  %v784_v42 = vld [vmem:[%s1498_s0 + $0x84] ss:$16 sm:%s381_s6]   ;;  %s472_s23 = smov 12  ;;  %s477_s7 = smov 48 }
  0x29   :  { %v417_v41 = vsel %vm75_vm2, %v791_v38, %v412_v39  ;;  %v785_v43 = vld [vmem:[%s1498_s0 + $0x84] ss:$16 sm:%s386_s15]   ;;  %v384_v44 = vsel %vm65_vm0, %v784_v42, %v783_v40  ;;  %v797_v47 = vld [vmem:[%s1498_s0 + $0xb] ss:$16 sm:%s446_s24]   ;;  %s482_s12 = smov 192  ;;  %s537_s15 = smov 3 }
  0x2a   :  { %418 = vrot.lane.b32.xlu1 %v417_v41, %s860_s5  ;;  %v786_v45 = vld [vmem:[%s1498_s0 + $0x84] ss:$16 sm:%s391_s20]   ;;  %v389_v46 = vsel %vm70_vm1, %v785_v43, %v384_v44  ;;  %s545_s20 = smov 48  ;;  %s550_s21 = smov 192 }
  0x2b   :  { %v798_v48 = vld [vmem:[%s1498_s0 + $0xb] ss:$16 sm:%s449_s25]   ;;  %v394_v49 = vsel %vm75_vm2, %v786_v45, %v389_v46  ;;  %v793_v54 = vld [vmem:[%s1498_s0 + $0x3] ss:$16 sm:%s424_s4]   ;;  %s500_s25 = smov 48  ;;  %s523_s2 = smov 48 }
  0x2c   :  { %v452_v50 = vsel %vm65_vm0, %v798_v48, %v797_v47  ;;  %v799_v51 = vld [vmem:[%s1498_s0 + $0xb] ss:$16 sm:%s454_s29]   ;;  %395 = vrot.lane.b32.xlu0 %v394_v49, %s860_s5  ;;  %s469_s29 = smov 3  ;;  %s528_s8 = smov 192 }
  0x2d   :  { %v800_v52 = vld [vmem:[%s1498_s0 + $0xb] ss:$16 sm:%s459_s30]   ;;  %v457_v53 = vsel %vm70_vm1, %v799_v51, %v452_v50  ;;  %v794_v56 = vld [vmem:[%s1498_s0 + $0x3] ss:$16 sm:%s427_s10]   ;;  %s518_s30 = smov 12  ;;  %s583_s10 = smov 3 }
  0x2e   :  { %v462_v55 = vsel %vm75_vm2, %v800_v52, %v457_v53  ;;  %v795_v57 = vld [vmem:[%s1498_s0 + $0x3] ss:$16 sm:%s432_s11]   ;;  %v430_v58 = vsel %vm65_vm0, %v794_v56, %v793_v54  ;;  %v807_v61 = vld [vmem:[%s1498_s0 + $0x8b] ss:$16 sm:%s492_s18]   ;;  %s586_s11 = smov 12  ;;  %s596_s5 = smov 192 }
  0x2f   :  { %463 = vrot.lane.b32.xlu1 %v462_v55, %s861_s26  ;;  %v796_v59 = vld [vmem:[%s1498_s0 + $0x3] ss:$16 sm:%s437_s16]   ;;  %v435_v60 = vsel %vm70_vm1, %v795_v57, %v430_v58  ;;  %s540_s16 = smov 12  ;;  %s862_s17 = smov 32  }
  0x30   :  { %v808_v62 = vld [vmem:[%s1498_s0 + $0x8b] ss:$16 sm:%s495_s19]   ;;  %v440_v63 = vsel %vm75_vm2, %v796_v59, %v435_v60  ;;  %v802_v4 = vld [vmem:[%s1498_s0 + $0x83] ss:$16 sm:%s469_s29]   ;;  %s568_s27 = smov 48  ;;  %s573_s3 = smov 192 }
  0x31   :  { %v498_v0 = vsel %vm65_vm0, %v808_v62, %v807_v61  ;;  %v809_v1 = vld [vmem:[%s1498_s0 + $0x8b] ss:$16 sm:%s500_s25]   ;;  %441 = vrot.lane.b32.xlu0 %v440_v63, %s861_s26  ;;  %s515_s25 = smov 3  ;;  %s641_s13 = smov 192 }
  0x32   :  { %v810_v2 = vld [vmem:[%s1498_s0 + $0x8b] ss:$16 sm:%s505_s14]   ;;  %v503_v3 = vsel %vm70_vm1, %v809_v1, %v498_v0  ;;  %v803_v6 = vld [vmem:[%s1498_s0 + $0x83] ss:$16 sm:%s472_s23]   ;;  %s563_s14 = smov 12  ;;  %s609_s24 = smov 12 }
  0x33   :  { %v508_v5 = vsel %vm75_vm2, %v810_v2, %v503_v3  ;;  %v804_v7 = vld [vmem:[%s1498_s0 + $0x83] ss:$16 sm:%s477_s7]   ;;  %v475_v8 = vsel %vm65_vm0, %v803_v6, %v802_v4  ;;  %v816_v11 = vld [vmem:[%s1498_s0 + $0xa] ss:$16 sm:%s537_s15]   ;;  %s628_s7 = smov 3  ;;  %s677_s4 = smov 12 }
  0x34   :  { %509 = vrot.lane.b32.xlu1 %v508_v5, %s861_s26  ;;  %v805_v9 = vld [vmem:[%s1498_s0 + $0x83] ss:$16 sm:%s482_s12]   ;;  %v480_v10 = vsel %vm70_vm1, %v804_v7, %v475_v8  ;;  %s636_s12 = smov 48  ;;  %v2_v38 = vld [vmem:[%s1498_s0] ss:$8 sm:$0xf]  }
  0x35   :  { %v817_v12 = vld [vmem:[%s1498_s0 + $0xa] ss:$16 sm:%s540_s16]   ;;  %v485_v13 = vsel %vm75_vm2, %v805_v9, %v480_v10  ;;  %v812_v18 = vld [vmem:[%s1498_s0 + $0x2] ss:$16 sm:%s515_s25]   ;;  %s591_s16 = smov 48  ;;  %s614_s25 = smov 48 }
  0x36   :  { %v543_v14 = vsel %vm65_vm0, %v817_v12, %v816_v11  ;;  %v818_v15 = vld [vmem:[%s1498_s0 + $0xa] ss:$16 sm:%s545_s20]   ;;  %486 = vrot.lane.b32.xlu0 %v485_v13, %s861_s26  ;;  %s560_s20 = smov 3  ;;  %v3_v48 = vld [vmem:[%s1498_s0] ss:$8 sm:$0xf0]  }
  0x37   :  { %v819_v16 = vld [vmem:[%s1498_s0 + $0xa] ss:$16 sm:%s550_s21]   ;;  %v548_v17 = vsel %vm70_vm1, %v818_v15, %v543_v14  ;;  %v813_v20 = vld [vmem:[%s1498_s0 + $0x2] ss:$16 sm:%s518_s30]   ;;  %s619_s30 = smov 192  ;;  %v5_v52 = vsel %vm4_vm3, %v3_v48, %v2_v38  ;;  %s664_s26 = smov 192 }
  0x38   :  { %v553_v19 = vsel %vm75_vm2, %v819_v16, %v548_v17  ;;  %v814_v21 = vld [vmem:[%s1498_s0 + $0x2] ss:$16 sm:%s523_s2]   ;;  %v521_v22 = vsel %vm65_vm0, %v813_v20, %v812_v18  ;;  %v826_v25 = vld [vmem:[%s1498_s0 + $0x8a] ss:$16 sm:%s583_s10]   ;;  %s674_s2 = smov 3 }
  0x39   :  { %554 = vrot.lane.b32.xlu1 %v553_v19, %s862_s17  ;;  %v815_v23 = vld [vmem:[%s1498_s0 + $0x2] ss:$16 sm:%s528_s8]   ;;  %v526_v24 = vsel %vm70_vm1, %v814_v21, %v521_v22  ;;  %s631_s8 = smov 12  ;;  %7 = vst.msk [vmem:[%s1499_s1] ss:$8 sm:$0x3] %vm6_vm4, %v5_v52  }
  0x3a   :  { %v827_v26 = vld [vmem:[%s1498_s0 + $0x8a] ss:$16 sm:%s586_s11]   ;;  %v531_v27 = vsel %vm75_vm2, %v815_v23, %v526_v24  ;;  %v821_v32 = vld [vmem:[%s1498_s0 + $0x82] ss:$16 sm:%s560_s20]   ;;  %s682_s11 = smov 48 }
  0x3b   :  { %v589_v28 = vsel %vm65_vm0, %v827_v26, %v826_v25  ;;  %v828_v29 = vld [vmem:[%s1498_s0 + $0x8a] ss:$16 sm:%s591_s16]   ;;  %532 = vrot.lane.b32.xlu0 %v531_v27, %s862_s17  ;;  %s606_s16 = smov 3  ;;  %696 = vst.msk [vmem:[%s1499_s1 - $0xf] ss:$8 sm:$0xc] %vm6_vm4, %v5_v52  }
  0x3c   :  { %v829_v30 = vld [vmem:[%s1498_s0 + $0x8a] ss:$16 sm:%s596_s5]   ;;  %v594_v31 = vsel %vm70_vm1, %v828_v29, %v589_v28  ;;  %v822_v34 = vld [vmem:[%s1498_s0 + $0x82] ss:$16 sm:%s563_s14]  }
  0x3d   :  { %v599_v33 = vsel %vm75_vm2, %v829_v30, %v594_v31  ;;  %v823_v35 = vld [vmem:[%s1498_s0 + $0x82] ss:$16 sm:%s568_s27]   ;;  %v566_v36 = vsel %vm65_vm0, %v822_v34, %v821_v32  ;;  %v835_v40 = vld [vmem:[%s1498_s0 + $0x9] ss:$16 sm:%s628_s7]  }
  0x3e   :  { %600 = vrot.lane.b32.xlu1 %v599_v33, %s862_s17  ;;  %v824_v37 = vld [vmem:[%s1498_s0 + $0x82] ss:$16 sm:%s573_s3]   ;;  %v571_v39 = vsel %vm70_vm1, %v823_v35, %v566_v36  ;;  %697 = vst.msk [vmem:[%s1499_s1 - $0x1e] ss:$8 sm:$0x30] %vm6_vm4, %v5_v52   ;;  %s659_s3 = smov 48 }
  0x3f   :  { %v836_v41 = vld [vmem:[%s1498_s0 + $0x9] ss:$16 sm:%s631_s8]   ;;  %v576_v42 = vsel %vm75_vm2, %v824_v37, %v571_v39  ;;  %v831_v47 = vld [vmem:[%s1498_s0 + $0x1] ss:$16 sm:%s606_s16]   ;;  %s651_s16 = smov 3 }
  0x40   :  { %v634_v43 = vsel %vm65_vm0, %v836_v41, %v835_v40  ;;  %v837_v44 = vld [vmem:[%s1498_s0 + $0x9] ss:$16 sm:%s636_s12]   ;;  %577 = vrot.lane.b32.xlu0 %v576_v42, %s862_s17  ;;  %s687_s12 = smov 192  ;;  %698 = vst.msk [vmem:[%s1499_s1 - $0x2d] ss:$8 sm:$0xc0] %vm6_vm4, %v5_v52  }
  0x41   :  { %v838_v45 = vld [vmem:[%s1498_s0 + $0x9] ss:$16 sm:%s641_s13]   ;;  %v639_v46 = vsel %vm70_vm1, %v837_v44, %v634_v43  ;;  %v832_v50 = vld [vmem:[%s1498_s0 + $0x1] ss:$16 sm:%s609_s24]   ;;  %s863_s13 = smov 16   ;;  %s654_s17 = smov 12 }
  0x42   :  { %v644_v49 = vsel %vm75_vm2, %v838_v45, %v639_v46  ;;  %v833_v51 = vld [vmem:[%s1498_s0 + $0x1] ss:$16 sm:%s614_s25]   ;;  %v612_v53 = vsel %vm65_vm0, %v832_v50, %v831_v47  ;;  %v699_v55 = vld [vmem:[%s1498_s0 + $0x40] ss:$8 sm:$0xf]  }
  0x43   :  { %645 = vrot.lane.b32.xlu1 %v644_v49, %s863_s13  ;;  %v834_v54 = vld [vmem:[%s1498_s0 + $0x1] ss:$16 sm:%s619_s30]   ;;  %v617_v56 = vsel %vm70_vm1, %v833_v51, %v612_v53  ;;  %v700_v1 = vld [vmem:[%s1498_s0 + $0x40] ss:$8 sm:$0xf0]  }
  0x44   :  { %v845_v57 = vld [vmem:[%s1498_s0 + $0x89] ss:$16 sm:%s674_s2]   ;;  %v622_v59 = vsel %vm75_vm2, %v834_v54, %v617_v56  ;;  %v840_v0 = vld [vmem:[%s1498_s0 + $0x81] ss:$16 sm:%s651_s16]   ;;  %v19_v5 = vsel %vm4_vm3, %v700_v1, %v699_v55 }
  0x45   :  { %v846_v58 = vld [vmem:[%s1498_s0 + $0x89] ss:$16 sm:%s677_s4]   ;;  %623 = vrot.lane.b32.xlu0 %v622_v59, %s863_s13  ;;  %701 = vst.msk [vmem:[%s1499_s1 + $0x4] ss:$8 sm:$0x3] %vm6_vm4, %v19_v5  }
  0x46   :  { %v680_v60 = vsel %vm65_vm0, %v846_v58, %v845_v57  ;;  %v847_v61 = vld [vmem:[%s1498_s0 + $0x89] ss:$16 sm:%s682_s11]   ;;  %v841_v3 = vld [vmem:[%s1498_s0 + $0x81] ss:$16 sm:%s654_s17]  }
  0x47   :  { %v848_v62 = vld [vmem:[%s1498_s0 + $0x89] ss:$16 sm:%s687_s12]   ;;  %v685_v63 = vsel %vm70_vm1, %v847_v61, %v680_v60  ;;  %v842_v4 = vld [vmem:[%s1498_s0 + $0x81] ss:$16 sm:%s659_s3]   ;;  %v657_v6 = vsel %vm65_vm0, %v841_v3, %v840_v0 }
  0x48   :  { %v690_v2 = vsel %vm75_vm2, %v848_v62, %v685_v63  ;;  %v843_v7 = vld [vmem:[%s1498_s0 + $0x81] ss:$16 sm:%s664_s26]   ;;  %702 = vst.msk [vmem:[%s1499_s1 - $0xb] ss:$8 sm:$0xc] %vm6_vm4, %v19_v5   ;;  %v662_v9 = vsel %vm70_vm1, %v842_v4, %v657_v6 }
  0x49   :  { %691 = vrot.lane.b32.xlu1 %v690_v2, %s863_s13  ;;  %703 = vst.msk [vmem:[%s1499_s1 - $0x1a] ss:$8 sm:$0x30] %vm6_vm4, %v19_v5   ;;  %704 = vst.msk [vmem:[%s1499_s1 - $0x29] ss:$8 sm:$0xc0] %vm6_vm4, %v19_v5   ;;  %v667_v12 = vsel %vm75_vm2, %v843_v7, %v662_v9 }
  0x4a   :  { %v705_v8 = vld [vmem:[%s1498_s0 + $0x80] ss:$8 sm:$0xf]   ;;  %668 = vrot.lane.b32.xlu0 %v667_v12, %s863_s13 }
  0x4b   :  { %v706_v10 = vld [vmem:[%s1498_s0 + $0x80] ss:$8 sm:$0xf0]  }
  0x4c   :  { %v711_v11 = vld [vmem:[%s1498_s0 + $0xc0] ss:$8 sm:$0xf]   ;;  %v34_v13 = vsel %vm4_vm3, %v706_v10, %v705_v8 }
  0x4d   :  { %v712_v14 = vld [vmem:[%s1498_s0 + $0xc0] ss:$8 sm:$0xf0]   ;;  %707 = vst.msk [vmem:[%s1499_s1 + $0x10] ss:$8 sm:$0x3] %vm6_vm4, %v34_v13  }
  0x4e   :  { %708 = vst.msk [vmem:[%s1499_s1 + $0x1] ss:$8 sm:$0xc] %vm6_vm4, %v34_v13   ;;  %709 = vst.msk [vmem:[%s1499_s1 - $0xe] ss:$8 sm:$0x30] %vm6_vm4, %v34_v13   ;;  %v49_v15 = vsel %vm4_vm3, %v712_v14, %v711_v11 }
  0x4f   :  { %710 = vst.msk [vmem:[%s1499_s1 - $0x1d] ss:$8 sm:$0xc0] %vm6_vm4, %v34_v13   ;;  %713 = vst.msk [vmem:[%s1499_s1 + $0x14] ss:$8 sm:$0x3] %vm6_vm4, %v49_v15  }
  0x50   :  { %714 = vst.msk [vmem:[%s1499_s1 + $0x5] ss:$8 sm:$0xc] %vm6_vm4, %v49_v15   ;;  %715 = vst.msk [vmem:[%s1499_s1 - $0xa] ss:$8 sm:$0x30] %vm6_vm4, %v49_v15  }
  0x51   :  { %716 = vst.msk [vmem:[%s1499_s1 - $0x19] ss:$8 sm:$0xc0] %vm6_vm4, %v49_v15  }
  0x78   :  { %v123_v16 = vpop.permute.xlu1 %122  }
  0x79   :  { %730 = vst.msk [vmem:[%s1499_s1 + $0x10] sm:$0xff] %vm79_vm5, %v123_v16  }
  0x7c   :  { %v78_v17 = vpop.permute.xlu0 %77  }
  0x7d   :  { %80 = vst.msk [vmem:[%s1499_s1] sm:$0xff] %vm79_vm5, %v78_v17   ;;  %v146_v18 = vpop.permute.xlu1 %145  }
  0x7e   :  { %735 = vst.msk [vmem:[%s1499_s1 + $0x18] sm:$0xff] %vm79_vm5, %v146_v18  }
  0x81   :  { %v100_v19 = vpop.permute.xlu0 %99  }
  0x82   :  { %725 = vst.msk [vmem:[%s1499_s1 + $0x8] sm:$0xff] %vm79_vm5, %v100_v19   ;;  %v191_v20 = vpop.permute.xlu1 %190  }
  0x83   :  { %744 = vst.msk [vmem:[%s1499_s1 + $0x8] sm:$0xff] %vm170_vm6, %v191_v20  }
  0x85   :  { %v169_v21 = vpop.permute.xlu0 %168  }
  0x86   :  { %171 = vst.msk [vmem:[%s1499_s1] sm:$0xff] %vm170_vm6, %v169_v21  }
  0x88   :  { %v237_v22 = vpop.permute.xlu1 %236  }
  0x89   :  { %754 = vst.msk [vmem:[%s1499_s1 + $0x18] sm:$0xff] %vm170_vm6, %v237_v22  }
  0x8a   :  { %v214_v23 = vpop.permute.xlu0 %213  }
  0x8b   :  { %749 = vst.msk [vmem:[%s1499_s1 + $0x10] sm:$0xff] %vm170_vm6, %v214_v23  }
  0x8d   :  { %v282_v24 = vpop.permute.xlu1 %281  }
  0x8e   :  { %763 = vst.msk [vmem:[%s1499_s1 + $0x8] sm:$0xff] %vm261_vm7, %v282_v24  }
  0x8f   :  { %v260_v25 = vpop.permute.xlu0 %259  }
  0x90   :  { %262 = vst.msk [vmem:[%s1499_s1] sm:$0xff] %vm261_vm7, %v260_v25  }
  0x92   :  { %v328_v26 = vpop.permute.xlu1 %327  }
  0x93   :  { %773 = vst.msk [vmem:[%s1499_s1 + $0x18] sm:$0xff] %vm261_vm7, %v328_v26  }
  0x94   :  { %v305_v27 = vpop.permute.xlu0 %304  }
  0x95   :  { %768 = vst.msk [vmem:[%s1499_s1 + $0x10] sm:$0xff] %vm261_vm7, %v305_v27  }
  0x97   :  { %v373_v28 = vpop.permute.xlu1 %372  }
  0x98   :  { %782 = vst.msk [vmem:[%s1499_s1 + $0x8] sm:$0xff] %vm352_vm8, %v373_v28  }
  0x99   :  { %v351_v29 = vpop.permute.xlu0 %350  }
  0x9a   :  { %353 = vst.msk [vmem:[%s1499_s1] sm:$0xff] %vm352_vm8, %v351_v29  }
  0x9c   :  { %v419_v30 = vpop.permute.xlu1 %418  }
  0x9d   :  { %792 = vst.msk [vmem:[%s1499_s1 + $0x18] sm:$0xff] %vm352_vm8, %v419_v30  }
  0x9e   :  { %v396_v31 = vpop.permute.xlu0 %395  }
  0x9f   :  { %787 = vst.msk [vmem:[%s1499_s1 + $0x10] sm:$0xff] %vm352_vm8, %v396_v31  }
  0xa1   :  { %v464_v32 = vpop.permute.xlu1 %463  }
  0xa2   :  { %801 = vst.msk [vmem:[%s1499_s1 + $0x8] sm:$0xff] %vm443_vm9, %v464_v32  }
  0xa3   :  { %v442_v33 = vpop.permute.xlu0 %441  }
  0xa4   :  { %444 = vst.msk [vmem:[%s1499_s1] sm:$0xff] %vm443_vm9, %v442_v33  }
  0xa6   :  { %v510_v34 = vpop.permute.xlu1 %509  }
  0xa7   :  { %811 = vst.msk [vmem:[%s1499_s1 + $0x18] sm:$0xff] %vm443_vm9, %v510_v34  }
  0xa8   :  { %v487_v35 = vpop.permute.xlu0 %486  }
  0xa9   :  { %806 = vst.msk [vmem:[%s1499_s1 + $0x10] sm:$0xff] %vm443_vm9, %v487_v35  }
  0xab   :  { %v555_v36 = vpop.permute.xlu1 %554  }
  0xac   :  { %820 = vst.msk [vmem:[%s1499_s1 + $0x8] sm:$0xff] %vm534_vm10, %v555_v36  }
  0xad   :  { %v533_v37 = vpop.permute.xlu0 %532  }
  0xae   :  { %535 = vst.msk [vmem:[%s1499_s1] sm:$0xff] %vm534_vm10, %v533_v37  }
  0xb0   :  { %v601_v38 = vpop.permute.xlu1 %600  }
  0xb1   :  { %830 = vst.msk [vmem:[%s1499_s1 + $0x18] sm:$0xff] %vm534_vm10, %v601_v38  }
  0xb2   :  { %v578_v39 = vpop.permute.xlu0 %577  }
  0xb3   :  { %825 = vst.msk [vmem:[%s1499_s1 + $0x10] sm:$0xff] %vm534_vm10, %v578_v39  }
  0xb5   :  { %v646_v40 = vpop.permute.xlu1 %645  }
  0xb6   :  { %839 = vst.msk [vmem:[%s1499_s1 + $0x8] sm:$0xff] %vm625_vm11, %v646_v40  }
  0xb7   :  { %v624_v41 = vpop.permute.xlu0 %623  }
  0xb8   :  { %626 = vst.msk [vmem:[%s1499_s1] sm:$0xff] %vm625_vm11, %v624_v41  }
  0xbb   :  { %v692_v42 = vpop.permute.xlu1 %691  }
  0xbc   :  { %849 = vst.msk [vmem:[%s1499_s1 + $0x18] sm:$0xff] %vm625_vm11, %v692_v42   ;;  %v669_v43 = vpop.permute.xlu0 %668  }
  0xbd   :  { %844 = vst.msk [vmem:[%s1499_s1 + $0x10] sm:$0xff] %vm625_vm11, %v669_v43  }

// kernel: tile.18
= control target key start
LH: loop header
LB: loop body
LE: loop exit
PB: predicated region body
PF: predicated region fallthrough
CT: control target
= control target key end

     0   :  { %s28_s0 = inlined_call_operand.vmem [shape: f32[16], index: 0, kind: input, shape index: {}]   ;;  %s29_s1 = inlined_call_operand.vmem [shape: f32[16,16], index: 1, kind: output, shape index: {}]  }
   0x1   :  { %v4_v0 = vld [vmem:[%s28_s0] ss:$0 sm:$0xff] }
   0x2   :  { %5 = vst [vmem:[%s29_s1] sm:$0xff] %v4_v0  ;;  %8 = vst [vmem:[%s29_s1 + $0x8] sm:$0xff] %v4_v0 }

// kernel: tile.19
= control target key start
LH: loop header
LB: loop body
LE: loop exit
PB: predicated region body
PF: predicated region fallthrough
CT: control target
= control target key end

     0   :  { %s7_s6 = smov 3  ;;  %s21_s9 = smov 3  ;;  %vm4_vm0 = vcmask 130048   ;;  %vm11_vm1 = vcmask 1048448   ;;  %vm18_vm2 = vcmask 917248   ;;  %vm25_vm3 = vcmask 786048   ;;  %s131_s0 = inlined_call_operand.vmem [shape: f32[16,16], index: 0, kind: input, shape index: {}]   ;;  %s132_s1 = inlined_call_operand.vmem [shape: f32[1,256], index: 1, kind: output, shape index: {}]  }
   0x1   :  { %v69_v0 = vld [vmem:[%s131_s0 + $0x7] ss:$8 sm:%s7_s6]   ;;  %s84_s10 = smov 112   ;;  %v71_v1 = vld [vmem:[%s131_s0 + $0x5] ss:$8 sm:%s21_s9]   ;;  %s14_s13 = smov 3 }
   0x2   :  { %9 = vrot.lane.b32.xlu0 %v69_v0, %s84_s10  ;;  %s85_s14 = smov 80   ;;  %v70_v2 = vld [vmem:[%s131_s0 + $0x6] ss:$8 sm:%s14_s13]   ;;  %s28_s17 = smov 3  ;;  %vm32_vm4 = vcmask 654848   ;;  %vm39_vm5 = vcmask 523648  }
   0x3   :  { %23 = vrot.lane.b32.xlu1 %v71_v1, %s85_s14  ;;  %v72_v3 = vld [vmem:[%s131_s0 + $0x4] ss:$8 sm:%s28_s17]   ;;  %s35_s20 = smov 3  ;;  %s42_s21 = smov 3  ;;  %vm46_vm6 = vcmask 392448   ;;  %vm53_vm7 = vcmask 261248  }
   0x4   :  { %s86_s22 = smov 96   ;;  %s87_s23 = smov 64   ;;  %v73_v4 = vld [vmem:[%s131_s0 + $0x3] ss:$8 sm:%s35_s20]   ;;  %v74_v5 = vld [vmem:[%s131_s0 + $0x2] ss:$8 sm:%s42_s21]  }
   0x5   :  { %s2_s26 = smov 3  ;;  %s49_s29 = smov 3 }
   0x6   :  { %16 = vrot.lane.b32.xlu0 %v70_v2, %s86_s22  ;;  %v3_v6 = vld [vmem:[%s131_s0] ss:$8 sm:%s2_s26]   ;;  %s88_s3 = smov 48   ;;  %s89_s4 = smov 32  }
   0x7   :  { %30 = vrot.lane.b32.xlu1 %v72_v3, %s87_s23  ;;  %5 = vst.msk [vmem:[#allocation0] ss:$8 sm:$0x3] %vm4_vm0, %v3_v6   ;;  %v75_v7 = vld [vmem:[%s131_s0 + $0x1] ss:$8 sm:%s49_s29]   ;;  %s90_s0 = smov 16  }
   0xa   :  { %37 = vrot.lane.b32.xlu0 %v73_v4, %s88_s3 }
   0xb   :  { %44 = vrot.lane.b32.xlu1 %v74_v5, %s89_s4 }
   0xe   :  { %51 = vrot.lane.b32.xlu0 %v75_v7, %s90_s0 }
  0x74   :  { %v10_v8 = vpop.permute.xlu0 %9  }
  0x75   :  { %12 = vst.msk [vmem:[#allocation0] ss:$8 sm:$0x3] %vm11_vm1, %v10_v8   ;;  %v24_v9 = vpop.permute.xlu1 %23  }
  0x78   :  { %v17_v10 = vpop.permute.xlu0 %16  }
  0x79   :  { %19 = vst.msk [vmem:[#allocation0] ss:$8 sm:$0x3] %vm18_vm2, %v17_v10   ;;  %v31_v11 = vpop.permute.xlu1 %30  }
  0x7a   :  { %26 = vst.msk [vmem:[#allocation0] ss:$8 sm:$0x3] %vm25_vm3, %v24_v9  }
  0x7b   :  { %33 = vst.msk [vmem:[#allocation0] ss:$8 sm:$0x3] %vm32_vm4, %v31_v11  }
  0x7c   :  { %v38_v12 = vpop.permute.xlu0 %37  }
  0x7d   :  { %40 = vst.msk [vmem:[#allocation0] ss:$8 sm:$0x3] %vm39_vm5, %v38_v12   ;;  %v45_v13 = vpop.permute.xlu1 %44  }
  0x7e   :  { %47 = vst.msk [vmem:[#allocation0] ss:$8 sm:$0x3] %vm46_vm6, %v45_v13  }
  0x80   :  { %v52_v14 = vpop.permute.xlu0 %51  }
  0x81   :  { %54 = vst.msk [vmem:[#allocation0] ss:$8 sm:$0x3] %vm53_vm7, %v52_v14  }
  0x88   :  { %v59_v15 = vld [vmem:[#allocation0] sm:$0x1]  ;;  %v64_v16 = vld [vmem:[#allocation0 + $0x8] sm:$0x1] }
  0x89   :  { %62 = vst [vmem:[%s132_s1] sm:$0x1] %v59_v15  ;;  %76 = vst [vmem:[%s132_s1 + $0x1] sm:$0x1] %v64_v16 }

// kernel: rcab_forward.1
= control target key start
LH: loop header
LB: loop body
LE: loop exit
PB: predicated region body
PF: predicated region fallthrough
CT: control target
= control target key end

     0   :  { %v46_v38 = vlaneseq  ;;  %vm2747_vm2 = vmmov 1   ;;  %vm1741_vm7 = vcmask 1041409   ;;  %vm2749_vm8 = vmmov 0   ;;  %s3864_s1 = inlined_call_operand.vmem [shape: bf16[768,256], index: 1, kind: input, shape index: {}]   ;;  %s3865_s0 = inlined_call_operand.vmem [shape: f32[2,16,256], index: 0, kind: input, shape index: {}]   ;;  %s3866_s3 = inlined_call_operand.vmem [shape: bf16[768,256], index: 3, kind: input, shape index: {}]   ;;  %s3867_s2 = inlined_call_operand.vmem [shape: f32[1,256], index: 2, kind: input, shape index: {}]   ;;  %s3868_s9 = inlined_call_operand.vmem [shape: f32[256,16], index: 9, kind: input, shape index: {}]   ;;  %s3869_s5 = inlined_call_operand.vmem [shape: f32[16,4], index: 5, kind: input, shape index: {}]   ;;  %s3870_s4 = inlined_call_operand.vmem [shape: f32[1,256], index: 4, kind: input, shape index: {}]   ;;  %s3871_s7 = inlined_call_operand.vmem [shape: f32[4,16], index: 7, kind: input, shape index: {}]   ;;  %s3872_s6 = inlined_call_operand.vmem [shape: f32[1,4], index: 6, kind: input, shape index: {}]   ;;  %s3873_s10 = inlined_call_operand.vmem [shape: f32[16,256], index: 10, kind: input, shape index: {}]   ;;  %s3874_s8 = inlined_call_operand.vmem [shape: f32[1,16], index: 8, kind: input, shape index: {}]   ;;  %s3875_s11 = inlined_call_operand.vmem [shape: f32[2,16,256], index: 11, kind: output, shape index: {}]  }
   0x1   :  { %v2447_v0 = vld [vmem:[%s3864_s1 + $0x74] ss:$8 sps:$4 sm:$0xff]   ;;  %v2449_v1 = vld [vmem:[%s3864_s1 + $0x70] ss:$8 sps:$4 sm:$0xff]   ;;  %v2453_v4 = vld [vmem:[%s3864_s1 + $0x64] ss:$8 sps:$4 sm:$0xff]  }
   0x2   :  { %703 = vmatprep.subr.bf16.mxu0 %v2447_v0  ;;  %v2450_v2 = vld [vmem:[%s3864_s1 + $0x174] ss:$8 sps:$4 sm:$0xff]   ;;  %v2452_v3 = vld [vmem:[%s3864_s1 + $0x170] ss:$8 sps:$4 sm:$0xff]   ;;  %v2455_v5 = vld [vmem:[%s3864_s1 + $0x60] ss:$8 sps:$4 sm:$0xff]  }
   0x3   :  { %704 = vmatpush1.bf16.msra.mxu0 %v2449_v1  ;;  %756 = vmatprep.subr.bf16.mxu1 %v2450_v2  ;;  %v2456_v6 = vld [vmem:[%s3864_s1 + $0x164] ss:$8 sps:$4 sm:$0xff]   ;;  %v2458_v7 = vld [vmem:[%s3864_s1 + $0x160] ss:$8 sps:$4 sm:$0xff]   ;;  %v2459_v8 = vld [vmem:[%s3864_s1 + $0x54] ss:$8 sps:$4 sm:$0xff]  }
   0x4   :  { %757 = vmatpush1.bf16.msra.mxu1 %v2452_v3  ;;  %705 = vmatprep.subr.bf16.mxu0 %v2453_v4  ;;  %v2461_v9 = vld [vmem:[%s3864_s1 + $0x50] ss:$8 sps:$4 sm:$0xff]   ;;  %v2462_v10 = vld [vmem:[%s3864_s1 + $0x154] ss:$8 sps:$4 sm:$0xff]   ;;  %v2465_v11 = vld [vmem:[%s3864_s1 + $0x44] ss:$8 sps:$4 sm:$0xff]  }
   0x5   :  { %758 = vmatprep.subr.bf16.mxu1 %v2456_v6  ;;  %v2464_v12 = vld [vmem:[%s3864_s1 + $0x150] ss:$8 sps:$4 sm:$0xff]   ;;  %v2468_v13 = vld [vmem:[%s3864_s1 + $0x144] ss:$8 sps:$4 sm:$0xff]   ;;  %v2467_v14 = vld [vmem:[%s3864_s1 + $0x40] ss:$8 sps:$4 sm:$0xff]  }
   0x6   :  { %v2471_v15 = vld [vmem:[%s3864_s1 + $0x34] ss:$8 sps:$4 sm:$0xff]   ;;  %v2470_v16 = vld [vmem:[%s3864_s1 + $0x140] ss:$8 sps:$4 sm:$0xff]   ;;  %v2473_v18 = vld [vmem:[%s3864_s1 + $0x30] ss:$8 sps:$4 sm:$0xff]  }
   0x7   :  { %706 = vmatpush1.bf16.msra.mxu0 %v2455_v5  ;;  %v2474_v17 = vld [vmem:[%s3864_s1 + $0x134] ss:$8 sps:$4 sm:$0xff]   ;;  %v2477_v19 = vld [vmem:[%s3864_s1 + $0x24] ss:$8 sps:$4 sm:$0xff]   ;;  %v2476_v20 = vld [vmem:[%s3864_s1 + $0x130] ss:$8 sps:$4 sm:$0xff]  }
   0x8   :  { %707 = vmatprep.subr.bf16.mxu0 %v2459_v8  ;;  %759 = vmatpush1.bf16.msra.mxu1 %v2458_v7  ;;  %v2480_v21 = vld [vmem:[%s3864_s1 + $0x124] ss:$8 sps:$4 sm:$0xff]   ;;  %v2479_v22 = vld [vmem:[%s3864_s1 + $0x20] ss:$8 sps:$4 sm:$0xff]   ;;  %v2483_v23 = vld [vmem:[%s3864_s1 + $0x14] ss:$8 sps:$4 sm:$0xff]  }
   0x9   :  { %760 = vmatprep.subr.bf16.mxu1 %v2462_v10  ;;  %v2482_v24 = vld [vmem:[%s3864_s1 + $0x120] ss:$8 sps:$4 sm:$0xff]   ;;  %v2486_v25 = vld [vmem:[%s3864_s1 + $0x114] ss:$8 sps:$4 sm:$0xff]   ;;  %v2485_v26 = vld [vmem:[%s3864_s1 + $0x10] ss:$8 sps:$4 sm:$0xff]  }
   0xa   :  { %v2489_v27 = vld [vmem:[%s3864_s1 + $0x4] ss:$8 sps:$4 sm:$0xff]   ;;  %v2488_v28 = vld [vmem:[%s3864_s1 + $0x110] ss:$8 sps:$4 sm:$0xff]   ;;  %v2491_v30 = vld [vmem:[%s3864_s1] ss:$8 sps:$4 sm:$0xff]  }
   0xb   :  { %708 = vmatpush1.bf16.msra.mxu0 %v2461_v9  ;;  %v2492_v29 = vld [vmem:[%s3864_s1 + $0x104] ss:$8 sps:$4 sm:$0xff]   ;;  %v2495_v31 = vld [vmem:[%s3864_s1 + $0xf4] ss:$8 sps:$4 sm:$0xff]   ;;  %v2494_v32 = vld [vmem:[%s3864_s1 + $0x100] ss:$8 sps:$4 sm:$0xff]  }
   0xc   :  { %709 = vmatprep.subr.bf16.mxu0 %v2465_v11  ;;  %761 = vmatpush1.bf16.msra.mxu1 %v2464_v12  ;;  %v2498_v33 = vld [vmem:[%s3864_s1 + $0x1f4] ss:$8 sps:$4 sm:$0xff]   ;;  %v2497_v34 = vld [vmem:[%s3864_s1 + $0xf0] ss:$8 sps:$4 sm:$0xff]   ;;  %v2501_v35 = vld [vmem:[%s3864_s1 + $0xe4] ss:$8 sps:$4 sm:$0xff]  }
   0xd   :  { %762 = vmatprep.subr.bf16.mxu1 %v2468_v13  ;;  %v2500_v36 = vld [vmem:[%s3864_s1 + $0x1f0] ss:$8 sps:$4 sm:$0xff]   ;;  %v2504_v37 = vld [vmem:[%s3864_s1 + $0x1e4] ss:$8 sps:$4 sm:$0xff]   ;;  %v2503_v39 = vld [vmem:[%s3864_s1 + $0xe0] ss:$8 sps:$4 sm:$0xff]  }
   0xe   :  { %v2507_v40 = vld [vmem:[%s3864_s1 + $0xd4] ss:$8 sps:$4 sm:$0xff]   ;;  %v2506_v41 = vld [vmem:[%s3864_s1 + $0x1e0] ss:$8 sps:$4 sm:$0xff]   ;;  %v2937_v43 = vshrl.u32 %v46_v38, 7  ;;  %vm1826_vm9 = vcmask 130048  }
   0xf   :  { %710 = vmatpush1.bf16.msra.mxu0 %v2467_v14  ;;  %v2510_v42 = vld [vmem:[%s3864_s1 + $0x1d4] ss:$8 sps:$4 sm:$0xff]   ;;  %v2509_v44 = vld [vmem:[%s3864_s1 + $0xd0] ss:$8 sps:$4 sm:$0xff]   ;;  %v2513_v45 = vld [vmem:[%s3864_s1 + $0xc4] ss:$8 sps:$4 sm:$0xff]  }
  0x10   :  { %711 = vmatprep.subr.bf16.mxu0 %v2471_v15  ;;  %763 = vmatpush1.bf16.msra.mxu1 %v2470_v16  ;;  %v2512_v46 = vld [vmem:[%s3864_s1 + $0x1d0] ss:$8 sps:$4 sm:$0xff]   ;;  %v2516_v47 = vld [vmem:[%s3864_s1 + $0x1c4] ss:$8 sps:$4 sm:$0xff]   ;;  %vm61_vm0 = vcmp.lt.s32.totalorder %v2937_v43, 1  ;;  %vm49_vm1 = vcmp.ne.s32.totalorder %v2937_v43, 0 }
  0x11   :  { %764 = vmatprep.subr.bf16.mxu1 %v2474_v17  ;;  %v2954_v48 = vld [vmem:[%s3865_s0 + $0x8] sm:$0xff]  ;;  %v2959_v49 = vld [vmem:[%s3865_s0 + $0x18] sm:$0xff]  ;;  %vm2996_vm3 = vmpackc.low %vm2747_vm2, %vm49_vm1  ;;  %vm86_vm4 = vcmp.lt.s32.totalorder %v2937_v43, 7  ;;  %vm1913_vm10 = vcmask 1043456   ;;  %vm1909_vm11 = vcmask 31744  }
  0x12   :  { %v2515_v50 = vld [vmem:[%s3864_s1 + $0xc0] ss:$8 sps:$4 sm:$0xff]   ;;  %v2968_v51 = vld [vmem:[%s3865_s0 + $0x38] sm:$0xff]  ;;  %v54_v52 = vrot.slane %v2954_v48, 7  ;;  %v56_v53 = vrot.slane %v2959_v49, 7  ;;  %v108_v54 = vpack.c.bf16 %v2959_v49, %v2954_v48  ;;  %v3028_v6 = vld [vmem:[%s3865_s0 + $0x10] sm:$0xff] }
  0x13   :  { %712 = vmatpush1.bf16.msra.mxu0 %v2473_v18  ;;  %v2518_v55 = vld [vmem:[%s3864_s1 + $0x1c0] ss:$8 sps:$4 sm:$0xff]   ;;  %v2519_v56 = vld [vmem:[%s3864_s1 + $0xb4] ss:$8 sps:$4 sm:$0xff]   ;;  %v60_v57 = vrot.slane %v2968_v51, 7  ;;  %v55_v12 = vrot.slane %v3028_v6, 7 }
  0x14   :  { %713 = vmatprep.subr.bf16.mxu0 %v2477_v19  ;;  %765 = vmatpush1.bf16.msra.mxu1 %v2476_v20  ;;  %v67_v58 = vsel %vm61_vm0, %v54_v52, %v56_v53  ;;  %v2522_v59 = vld [vmem:[%s3864_s1 + $0x1b4] ss:$8 sps:$4 sm:$0xff]   ;;  %v2521_v62 = vld [vmem:[%s3864_s1 + $0xb0] ss:$8 sps:$4 sm:$0xff]   ;;  %v2525_v1 = vld [vmem:[%s3864_s1 + $0xa4] ss:$8 sps:$4 sm:$0xff]  }
  0x15   :  { %766 = vmatprep.subr.bf16.mxu1 %v2480_v21  ;;  %788 = vmatprep.mubr.bf16.mxu1 %v108_v54  ;;  %v69_v60 = vsel %vm61_vm0, %v60_v57, %v54_v52  ;;  %v2524_v63 = vld [vmem:[%s3864_s1 + $0x1b0] ss:$8 sps:$4 sm:$0xff]   ;;  %v2527_v2 = vld [vmem:[%s3864_s1 + $0xa0] ss:$8 sps:$4 sm:$0xff]   ;;  %v2528_v3 = vld [vmem:[%s3864_s1 + $0x1a4] ss:$8 sps:$4 sm:$0xff]  }
  0x16   :  { %v2241_v0 = vpack.c.bf16 %v67_v58, %v69_v60  ;;  %v2531_v4 = vld [vmem:[%s3864_s1 + $0x94] ss:$8 sps:$4 sm:$0xff]   ;;  %v3023_v5 = vld [vmem:[%s3865_s0] sm:$0xff]  ;;  %v2533_v10 = vld [vmem:[%s3864_s1 + $0x90] ss:$8 sps:$4 sm:$0xff]  }
  0x17   :  { %714 = vmatpush1.bf16.msra.mxu0 %v2479_v22  ;;  %v3033_v7 = vld [vmem:[%s3865_s0 + $0x30] sm:$0xff]  ;;  %v2530_v8 = vld [vmem:[%s3864_s1 + $0x1a0] ss:$8 sps:$4 sm:$0xff]   ;;  %v53_v11 = vrot.slane %v3023_v5, 7  ;;  %v2537_v14 = vld [vmem:[%s3864_s1 + $0x84] ss:$8 sps:$4 sm:$0xff]  }
  0x18   :  { %715 = vmatprep.subr.bf16.mxu0 %v2483_v23  ;;  %767 = vmatpush1.bf16.msra.mxu1 %v2482_v24  ;;  %v2534_v9 = vld [vmem:[%s3864_s1 + $0x194] ss:$8 sps:$4 sm:$0xff]   ;;  %v59_v13 = vrot.slane %v3033_v7, 7  ;;  %v2536_v15 = vld [vmem:[%s3864_s1 + $0x190] ss:$8 sps:$4 sm:$0xff]   ;;  %v3075_v24 = vld [vmem:[%s3865_s0 + $0x28] sm:$0xff] }
  0x19   :  { %768 = vmatprep.subr.bf16.mxu1 %v2486_v25  ;;  %2242 = vmatprep.mubr.msk.bf16.mxu0 %vm2996_vm3, %v2241_v0  ;;  %v2540_v16 = vld [vmem:[%s3864_s1 + $0x184] ss:$8 sps:$4 sm:$0xff]   ;;  %v2539_v17 = vld [vmem:[%s3864_s1 + $0x80] ss:$8 sps:$4 sm:$0xff]   ;;  %v66_v18 = vsel %vm61_vm0, %v53_v11, %v55_v12  ;;  %v2545_v20 = vld [vmem:[%s3864_s1 + $0x274] ss:$8 sps:$4 sm:$0xff]  }
  0x1a   :  { %v68_v19 = vsel %vm61_vm0, %v59_v13, %v53_v11  ;;  %v2542_v21 = vld [vmem:[%s3864_s1 + $0x180] ss:$8 sps:$4 sm:$0xff]   ;;  %v2543_v23 = vld [vmem:[%s3864_s1 + $0x270] ss:$8 sps:$4 sm:$0xff]   ;;  %v58_v25 = vrot.slane %v3075_v24, 7 }
  0x1b   :  { %716 = vmatpush1.bf16.msra.mxu0 %v2485_v26  ;;  %v2244_v22 = vpack.c.bf16 %v66_v18, %v68_v19  ;;  %v3082_v26 = vld [vmem:[%s3865_s0 + $0x20] sm:$0xff]  ;;  %v2557_v54 = vld [vmem:[%s3864_s1 + $0x234] ss:$8 sps:$4 sm:$0xff]   ;;  %v2567_v0 = vld [vmem:[%s3864_s1 + $0x2f0] ss:$8 sps:$4 sm:$0xff]  }
  0x1c   :  { %717 = vmatprep.subr.bf16.mxu0 %v2489_v27  ;;  %769 = vmatpush1.bf16.msra.mxu1 %v2488_v28  ;;  %v79_v27 = vrot.slane %v2954_v48, 1  ;;  %v107_v28 = vpack.c.bf16 %v3028_v6, %v3023_v5  ;;  %v2546_v38 = vld [vmem:[%s3864_s1 + $0x260] ss:$8 sps:$4 sm:$0xff]   ;;  %v2563_v58 = vld [vmem:[%s3864_s1 + $0x214] ss:$8 sps:$4 sm:$0xff]  }
  0x1d   :  { %770 = vmatprep.subr.bf16.mxu1 %v2492_v29  ;;  %v2548_v29 = vld [vmem:[%s3864_s1 + $0x264] ss:$8 sps:$4 sm:$0xff]   ;;  %v2579_v11 = vld [vmem:[%s3864_s1 + $0x2b0] ss:$8 sps:$4 sm:$0xff]  }
  0x1e   :  { %v2566_v60 = vld [vmem:[%s3864_s1 + $0x204] ss:$8 sps:$4 sm:$0xff]   ;;  %v2585_v18 = vld [vmem:[%s3864_s1 + $0x290] ss:$8 sps:$4 sm:$0xff]  }
  0x1f   :  { %718 = vmatpush1.bf16.msra.mxu0 %v2491_v30  ;;  %v57_v30 = vrot.slane %v3082_v26, 7  ;;  %v2590_v19 = vld [vmem:[%s3864_s1 + $0x284] ss:$8 sps:$4 sm:$0xff]   ;;  %v1719_v52 = vld [vmem:[%s3868_s9 + $0x70] sm:$0xff] }
  0x20   :  { %719 = vmatprep.subr.bf16.mxu0 %v2495_v31  ;;  %771 = vmatpush1.bf16.msra.mxu1 %v2494_v32  ;;  %v81_v31 = vrot.slane %v2959_v49, 1  ;;  %v83_v32 = vrot.slane %v3075_v24, 1  ;;  %v2554_v49 = vld [vmem:[%s3864_s1 + $0x244] ss:$8 sps:$4 sm:$0xff]  }
  0x21   :  { %772 = vmatprep.subr.bf16.mxu1 %v2498_v33  ;;  %v63_v33 = vsel %vm61_vm0, %v58_v25, %v60_v57  ;;  %v2558_v57 = vld [vmem:[%s3864_s1 + $0x220] ss:$8 sps:$4 sm:$0xff]   ;;  %v2704_v61 = vld [vmem:[%s3866_s3 + $0x224] ss:$8 sps:$4 sm:$0xff]  }
  0x23   :  { %720 = vmatpush2.bf16.msra.mxu0 %v2497_v34  ;;  %v65_v34 = vsel %vm61_vm0, %v56_v53, %v58_v25  ;;  %v2552_v53 = vld [vmem:[%s3864_s1 + $0x240] ss:$8 sps:$4 sm:$0xff]  }
  0x24   :  { %721 = vmatprep.subr.bf16.mxu0 %v2501_v35  ;;  %773 = vmatpush2.bf16.msra.mxu1 %v2500_v36  ;;  %v110_v35 = vpack.c.bf16 %v2968_v51, %v3075_v24  ;;  %v48_v36 = vadd.s32 8, %v2937_v43 }
  0x25   :  { %774 = vmatprep.subr.bf16.mxu1 %v2504_v37  ;;  %v2247_v37 = vpack.c.bf16 %v63_v33, %v65_v34  ;;  %v2602_v33 = vld [vmem:[%s3866_s3 + $0x74] ss:$8 sps:$4 sm:$0xff]   ;;  %v2597_v34 = vld [vmem:[%s3866_s3 + $0x150] ss:$8 sps:$4 sm:$0xff]  }
  0x26   :  { %vm52_vm5 = vcmp.ne.s32.totalorder %v48_v36, 15  ;;  %v2606_v36 = vld [vmem:[%s3866_s3 + $0x60] ss:$8 sps:$4 sm:$0xff]  }
  0x27   :  { %722 = vmatpush2.bf16.msra.mxu0 %v2503_v39  ;;  %v62_v39 = vsel %vm61_vm0, %v57_v30, %v59_v13  ;;  %vm3135_vm6 = vmpackc.low %vm52_vm5, %vm2747_vm2  ;;  %v2582_v13 = vld [vmem:[%s3864_s1 + $0x2a0] ss:$8 sps:$4 sm:$0xff]  }
  0x28   :  { %723 = vmatprep.subr.bf16.mxu0 %v2507_v40  ;;  %775 = vmatpush2.bf16.msra.mxu1 %v2506_v41  ;;  %v64_v40 = vsel %vm61_vm0, %v55_v12, %v57_v30  ;;  %v2551_v41 = vld [vmem:[%s3864_s1 + $0x254] ss:$8 sps:$4 sm:$0xff]   ;;  %v2584_v12 = vld [vmem:[%s3864_s1 + $0x2a4] ss:$8 sps:$4 sm:$0xff]   ;;  %v2594_v30 = vld [vmem:[%s3866_s3 + $0x160] ss:$8 sps:$4 sm:$0xff]  }
  0x29   :  { %776 = vmatprep.subr.bf16.mxu1 %v2510_v42  ;;  %v90_v42 = vsel %vm86_vm4, %v81_v31, %v83_v32 }
  0x2b   :  { %724 = vmatpush2.bf16.msra.mxu0 %v2509_v44  ;;  %v92_v44 = vsel %vm86_vm4, %v79_v27, %v81_v31  ;;  %v2599_v31 = vld [vmem:[%s3866_s3 + $0x154] ss:$8 sps:$4 sm:$0xff]  }
  0x2c   :  { %725 = vmatprep.subr.bf16.mxu0 %v2513_v45  ;;  %777 = vmatpush2.bf16.msra.mxu1 %v2512_v46  ;;  %v2250_v45 = vpack.c.bf16 %v62_v39, %v64_v40  ;;  %v2549_v46 = vld [vmem:[%s3864_s1 + $0x250] ss:$8 sps:$4 sm:$0xff]   ;;  %v2603_v39 = vld [vmem:[%s3866_s3 + $0x140] ss:$8 sps:$4 sm:$0xff]   ;;  %v2611_v40 = vld [vmem:[%s3866_s3 + $0x134] ss:$8 sps:$4 sm:$0xff]  }
  0x2d   :  { %778 = vmatprep.subr.bf16.mxu1 %v2516_v47  ;;  %v2253_v47 = vpack.c.bf16 %v90_v42, %v92_v44  ;;  %v2620_v42 = vld [vmem:[%s3866_s3 + $0x44] ss:$8 sps:$4 sm:$0xff]   ;;  %v2609_v44 = vld [vmem:[%s3866_s3 + $0x130] ss:$8 sps:$4 sm:$0xff]  }
  0x2f   :  { %726 = vmatpush2.bf16.msra.mxu0 %v2515_v50  ;;  %v109_v50 = vpack.c.bf16 %v3033_v7, %v3082_v26 }
  0x30   :  { %727 = vmatprep.subr.bf16.mxu0 %v2519_v56  ;;  %779 = vmatpush2.bf16.msra.mxu1 %v2518_v55  ;;  %v2555_v55 = vld [vmem:[%s3864_s1 + $0x230] ss:$8 sps:$4 sm:$0xff]   ;;  %v2560_v56 = vld [vmem:[%s3864_s1 + $0x224] ss:$8 sps:$4 sm:$0xff]  }
  0x31   :  { %780 = vmatprep.subr.bf16.mxu1 %v2522_v59  ;;  %v2561_v59 = vld [vmem:[%s3864_s1 + $0x210] ss:$8 sps:$4 sm:$0xff]  }
  0x33   :  { %728 = vmatpush2.bf16.msra.mxu0 %v2521_v62  ;;  %v2564_v62 = vld [vmem:[%s3864_s1 + $0x200] ss:$8 sps:$4 sm:$0xff]  }
  0x34   :  { %729 = vmatprep.subr.bf16.mxu0 %v2525_v1  ;;  %781 = vmatpush2.bf16.msra.mxu1 %v2524_v63  ;;  %v2569_v63 = vld [vmem:[%s3864_s1 + $0x2f4] ss:$8 sps:$4 sm:$0xff]   ;;  %v2572_v1 = vld [vmem:[%s3864_s1 + $0x2e4] ss:$8 sps:$4 sm:$0xff]  }
  0x35   :  { %782 = vmatprep.subr.bf16.mxu1 %v2528_v3  ;;  %v2575_v3 = vld [vmem:[%s3864_s1 + $0x2d4] ss:$8 sps:$4 sm:$0xff]  }
  0x37   :  { %730 = vmatpush2.bf16.msra.mxu0 %v2527_v2  ;;  %v2570_v2 = vld [vmem:[%s3864_s1 + $0x2e0] ss:$8 sps:$4 sm:$0xff]  }
  0x38   :  { %731 = vmatprep.subr.bf16.mxu0 %v2531_v4  ;;  %783 = vmatpush2.bf16.msra.mxu1 %v2530_v8  ;;  %v2573_v4 = vld [vmem:[%s3864_s1 + $0x2d0] ss:$8 sps:$4 sm:$0xff]   ;;  %v2578_v8 = vld [vmem:[%s3864_s1 + $0x2c4] ss:$8 sps:$4 sm:$0xff]  }
  0x39   :  { %784 = vmatprep.subr.bf16.mxu1 %v2534_v9  ;;  %v2576_v9 = vld [vmem:[%s3864_s1 + $0x2c0] ss:$8 sps:$4 sm:$0xff]  }
  0x3b   :  { %732 = vmatpush2.bf16.msra.mxu0 %v2533_v10  ;;  %v2581_v10 = vld [vmem:[%s3864_s1 + $0x2b4] ss:$8 sps:$4 sm:$0xff]  }
  0x3c   :  { %733 = vmatprep.subr.bf16.mxu0 %v2537_v14  ;;  %785 = vmatpush2.bf16.msra.mxu1 %v2536_v15  ;;  %v2587_v14 = vld [vmem:[%s3864_s1 + $0x294] ss:$8 sps:$4 sm:$0xff]   ;;  %v78_v15 = vrot.slane %v3023_v5, 1  ;;  %v2588_v5 = vld [vmem:[%s3864_s1 + $0x280] ss:$8 sps:$4 sm:$0xff]  }
  0x3d   :  { %786 = vmatprep.subr.bf16.mxu1 %v2540_v16  ;;  %v80_v16 = vrot.slane %v3028_v6, 1 }
  0x3f   :  { %734 = vmatpush2.bf16.msra.mxu0 %v2539_v17  ;;  %v82_v17 = vrot.slane %v3082_v26, 1  ;;  %v84_v26 = vrot.slane %v3033_v7, 1  ;;  %v2591_v7 = vld [vmem:[%s3866_s3 + $0x170] ss:$8 sps:$4 sm:$0xff]  }
  0x40   :  { %809 = vmatprep.subr.bf16.mxu0 %v2545_v20  ;;  %787 = vmatpush2.bf16.msra.mxu1 %v2542_v21  ;;  %v85_v20 = vrot.slane %v2968_v51, 1  ;;  %v91_v21 = vsel %vm86_vm4, %v78_v15, %v80_v16 }
  0x41   :  { %v89_v6 = vsel %vm86_vm4, %v80_v16, %v82_v17  ;;  %v87_v24 = vsel %vm86_vm4, %v82_v17, %v84_v26  ;;  %v93_v48 = vsel %vm86_vm4, %v84_v26, %v78_v15  ;;  %1518 = vmatprep.subr.bf16.mxu1 %v2602_v33  ;;  %v2659_v15 = vld [vmem:[%s3866_s3 + $0x1b4] ss:$8 sps:$4 sm:$0xff]   ;;  %v2657_v16 = vld [vmem:[%s3866_s3 + $0x1b0] ss:$8 sps:$4 sm:$0xff]   ;;  %v2675_v26 = vld [vmem:[%s3866_s3 + $0x180] ss:$8 sps:$4 sm:$0xff]  }
  0x42   :  { %2245 = vmatmul.mubr.msk.bf16.vlgmr.msra.gmra.mxu0 %vm2996_vm3, %v2244_v22  ;;  %v88_v22 = vsel %vm86_vm4, %v83_v32, %v85_v20  ;;  %v94_v51 = vsel %vm86_vm4, %v85_v20, %v79_v27  ;;  %v2593_v27 = vld [vmem:[%s3866_s3 + $0x174] ss:$8 sps:$4 sm:$0xff]   ;;  %v2600_v32 = vld [vmem:[%s3866_s3 + $0x70] ss:$8 sps:$4 sm:$0xff]   ;;  %v2663_v20 = vld [vmem:[%s3866_s3 + $0x1a0] ss:$8 sps:$4 sm:$0xff]  }
  0x43   :  { %810 = vmatpush1.bf16.msra.mxu0 %v2543_v23  ;;  %789 = vmatmul.mubr.bf16.vlgmr.msra.gmra.mxu1 %v107_v28  ;;  %v2256_v23 = vpack.c.bf16 %v89_v6, %v91_v21  ;;  %v2259_v25 = vpack.c.bf16 %v94_v51, %v88_v22  ;;  %v2262_v28 = vpack.c.bf16 %v93_v48, %v87_v24  ;;  %v2662_v17 = vld [vmem:[%s3866_s3 + $0xd4] ss:$8 sps:$4 sm:$0xff]   ;;  %v2666_v6 = vld [vmem:[%s3866_s3 + $0xc0] ss:$8 sps:$4 sm:$0xff]   ;;  %v2669_v22 = vld [vmem:[%s3866_s3 + $0x190] ss:$8 sps:$4 sm:$0xff]  }
  0x44   :  { %811 = vmatprep.subr.bf16.mxu0 %v2548_v29  ;;  %2248 = vmatprep.mubr.msk.bf16.mxu0 %vm2996_vm3, %v2247_v37  ;;  %v2596_v29 = vld [vmem:[%s3866_s3 + $0x164] ss:$8 sps:$4 sm:$0xff]   ;;  %v2671_v21 = vld [vmem:[%s3866_s3 + $0x194] ss:$8 sps:$4 sm:$0xff]   ;;  %v2678_v48 = vld [vmem:[%s3866_s3 + $0xa0] ss:$8 sps:$4 sm:$0xff]  }
  0x45   :  { %798 = vmatprep.mubr.bf16.mxu1 %v110_v35  ;;  %v2608_v35 = vld [vmem:[%s3866_s3 + $0x64] ss:$8 sps:$4 sm:$0xff]   ;;  %1519 = vmatpush1.bf16.msra.mxu1 %v2600_v32  ;;  %v2674_v51 = vld [vmem:[%s3866_s3 + $0xb4] ss:$8 sps:$4 sm:$0xff]  }
  0x46   :  { %v2605_v37 = vld [vmem:[%s3866_s3 + $0x144] ss:$8 sps:$4 sm:$0xff]   ;;  %1520 = vmatprep.subr.bf16.mxu1 %v2608_v35 }
  0x47   :  { %812 = vmatpush1.bf16.msra.mxu0 %v2546_v38  ;;  %v2614_v38 = vld [vmem:[%s3866_s3 + $0x54] ss:$8 sps:$4 sm:$0xff]   ;;  %v2680_v24 = vld [vmem:[%s3866_s3 + $0xa4] ss:$8 sps:$4 sm:$0xff]  }
  0x48   :  { %813 = vmatprep.subr.bf16.mxu0 %v2551_v41  ;;  %v2612_v41 = vld [vmem:[%s3866_s3 + $0x50] ss:$8 sps:$4 sm:$0xff]  }
  0x49   :  { %1521 = vmatpush1.bf16.msra.mxu1 %v2606_v36 }
  0x4a   :  { %2251 = vmatmul.mubr.msk.bf16.gmra.mxu0 %vm2996_vm3, %v2250_v45  ;;  %1522 = vmatprep.subr.bf16.mxu1 %v2614_v38  ;;  %v2617_v45 = vld [vmem:[%s3866_s3 + $0x124] ss:$8 sps:$4 sm:$0xff]   ;;  %v211_v38 = vld [vmem:[%s3867_s2] sm:$0x3] }
  0x4b   :  { %814 = vmatpush1.bf16.msra.mxu0 %v2549_v46  ;;  %2254 = vmatprep.mubr.msk.bf16.mxu0 %vm3135_vm6, %v2253_v47  ;;  %v2618_v46 = vld [vmem:[%s3866_s3 + $0x40] ss:$8 sps:$4 sm:$0xff]   ;;  %v2626_v47 = vld [vmem:[%s3866_s3 + $0x34] ss:$8 sps:$4 sm:$0xff]  }
  0x4c   :  { %815 = vmatprep.subr.bf16.mxu0 %v2554_v49  ;;  %799 = vmatmul.mubr.bf16.gmra.mxu1 %v109_v50  ;;  %v2615_v49 = vld [vmem:[%s3866_s3 + $0x120] ss:$8 sps:$4 sm:$0xff]   ;;  %v2623_v50 = vld [vmem:[%s3866_s3 + $0x114] ss:$8 sps:$4 sm:$0xff]  }
  0x4d   :  { %1523 = vmatpush1.bf16.msra.mxu1 %v2612_v41 }
  0x4e   :  { %1524 = vmatprep.subr.bf16.mxu1 %v2620_v42  ;;  %v3448_v42 = vsub.s32 1, %v2937_v43 }
  0x4f   :  { %816 = vmatpush1.bf16.msra.mxu0 %v2552_v53  ;;  %v2624_v53 = vld [vmem:[%s3866_s3 + $0x30] ss:$8 sps:$4 sm:$0xff]  }
  0x50   :  { %817 = vmatprep.subr.bf16.mxu0 %v2557_v54  ;;  %v2632_v54 = vld [vmem:[%s3866_s3 + $0x24] ss:$8 sps:$4 sm:$0xff]  }
  0x51   :  { %1525 = vmatpush1.bf16.msra.mxu1 %v2618_v46 }
  0x52   :  { %1526 = vmatprep.subr.bf16.mxu1 %v2626_v47  ;;  %v220_v47 = vrot.slane %v211_v38, %v3448_v42 }
  0x53   :  { %818 = vmatpush1.bf16.msra.mxu0 %v2555_v55  ;;  %v2621_v55 = vld [vmem:[%s3866_s3 + $0x110] ss:$8 sps:$4 sm:$0xff]  }
  0x54   :  { %819 = vmatprep.subr.bf16.mxu0 %v2560_v56  ;;  %v2629_v56 = vld [vmem:[%s3866_s3 + $0x104] ss:$8 sps:$4 sm:$0xff]  }
  0x55   :  { %1527 = vmatpush1.bf16.msra.mxu1 %v2624_v53 }
  0x56   :  { %1528 = vmatprep.subr.bf16.mxu1 %v2632_v54 }
  0x57   :  { %820 = vmatpush1.bf16.msra.mxu0 %v2558_v57  ;;  %v2630_v57 = vld [vmem:[%s3866_s3 + $0x20] ss:$8 sps:$4 sm:$0xff]  }
  0x58   :  { %821 = vmatprep.subr.bf16.mxu0 %v2563_v58  ;;  %v2638_v58 = vld [vmem:[%s3866_s3 + $0x14] ss:$8 sps:$4 sm:$0xff]  }
  0x59   :  { %1529 = vmatpush1.bf16.msra.mxu1 %v2630_v57 }
  0x5a   :  { %1530 = vmatprep.subr.bf16.mxu1 %v2638_v58 }
  0x5b   :  { %822 = vmatpush1.bf16.msra.mxu0 %v2561_v59  ;;  %v2627_v59 = vld [vmem:[%s3866_s3 + $0x100] ss:$8 sps:$4 sm:$0xff]  }
  0x5c   :  { %823 = vmatprep.subr.bf16.mxu0 %v2566_v60  ;;  %v2635_v60 = vld [vmem:[%s3866_s3 + $0x1f4] ss:$8 sps:$4 sm:$0xff]  }
  0x5f   :  { %824 = vmatpush1.bf16.msra.mxu0 %v2564_v62  ;;  %v2636_v62 = vld [vmem:[%s3866_s3 + $0x10] ss:$8 sps:$4 sm:$0xff]  }
  0x60   :  { %825 = vmatprep.subr.bf16.mxu0 %v2569_v63  ;;  %v2644_v63 = vld [vmem:[%s3866_s3 + $0x4] ss:$8 sps:$4 sm:$0xff]   ;;  %1531 = vmatpush1.bf16.msra.mxu1 %v2636_v62 }
  0x61   :  { %1532 = vmatprep.subr.bf16.mxu1 %v2644_v63 }
  0x63   :  { %826 = vmatpush2.bf16.msra.mxu0 %v2567_v0  ;;  %v2633_v0 = vld [vmem:[%s3866_s3 + $0x1f0] ss:$8 sps:$4 sm:$0xff]  }
  0x64   :  { %827 = vmatprep.subr.bf16.mxu0 %v2572_v1  ;;  %v2642_v1 = vld [vmem:[%s3866_s3] ss:$8 sps:$4 sm:$0xff]  }
  0x65   :  { %1533 = vmatpush1.bf16.msra.mxu1 %v2642_v1 }
  0x67   :  { %828 = vmatpush2.bf16.msra.mxu0 %v2570_v2  ;;  %v2641_v2 = vld [vmem:[%s3866_s3 + $0x1e4] ss:$8 sps:$4 sm:$0xff]  }
  0x68   :  { %829 = vmatprep.subr.bf16.mxu0 %v2575_v3  ;;  %v2650_v3 = vld [vmem:[%s3866_s3 + $0xf4] ss:$8 sps:$4 sm:$0xff]  }
  0x69   :  { %1534 = vmatprep.subr.bf16.mxu1 %v2650_v3 }
  0x6b   :  { %830 = vmatpush2.bf16.msra.mxu0 %v2573_v4  ;;  %v2639_v4 = vld [vmem:[%s3866_s3 + $0x1e0] ss:$8 sps:$4 sm:$0xff]  }
  0x6c   :  { %831 = vmatprep.subr.bf16.mxu0 %v2578_v8  ;;  %v2648_v8 = vld [vmem:[%s3866_s3 + $0xf0] ss:$8 sps:$4 sm:$0xff]  }
  0x6d   :  { %1535 = vmatpush2.bf16.msra.mxu1 %v2648_v8 }
  0x6f   :  { %832 = vmatpush2.bf16.msra.mxu0 %v2576_v9  ;;  %v2647_v9 = vld [vmem:[%s3866_s3 + $0x1d4] ss:$8 sps:$4 sm:$0xff]  }
  0x70   :  { %833 = vmatprep.subr.bf16.mxu0 %v2581_v10  ;;  %v2656_v10 = vld [vmem:[%s3866_s3 + $0xe4] ss:$8 sps:$4 sm:$0xff]  }
  0x71   :  { %1536 = vmatprep.subr.bf16.mxu1 %v2656_v10 }
  0x73   :  { %834 = vmatpush2.bf16.msra.mxu0 %v2579_v11  ;;  %v2645_v11 = vld [vmem:[%s3866_s3 + $0x1d0] ss:$8 sps:$4 sm:$0xff]  }
  0x74   :  { %835 = vmatprep.subr.bf16.mxu0 %v2584_v12  ;;  %v2654_v12 = vld [vmem:[%s3866_s3 + $0xe0] ss:$8 sps:$4 sm:$0xff]  }
  0x75   :  { %1537 = vmatpush2.bf16.msra.mxu1 %v2654_v12 }
  0x76   :  { %1538 = vmatprep.subr.bf16.mxu1 %v2662_v17 }
  0x77   :  { %836 = vmatpush2.bf16.msra.mxu0 %v2582_v13  ;;  %v2653_v13 = vld [vmem:[%s3866_s3 + $0x1c4] ss:$8 sps:$4 sm:$0xff]  }
  0x78   :  { %837 = vmatprep.subr.bf16.mxu0 %v2587_v14  ;;  %v2651_v14 = vld [vmem:[%s3866_s3 + $0x1c0] ss:$8 sps:$4 sm:$0xff]  }
  0x7b   :  { %838 = vmatpush2.bf16.msra.mxu0 %v2585_v18  ;;  %v2660_v18 = vld [vmem:[%s3866_s3 + $0xd0] ss:$8 sps:$4 sm:$0xff]  }
  0x7c   :  { %839 = vmatprep.subr.bf16.mxu0 %v2590_v19  ;;  %v2665_v19 = vld [vmem:[%s3866_s3 + $0x1a4] ss:$8 sps:$4 sm:$0xff]   ;;  %1539 = vmatpush2.bf16.msra.mxu1 %v2660_v18 }
  0x7f   :  { %840 = vmatpush2.bf16.msra.mxu0 %v2588_v5  ;;  %v2668_v5 = vld [vmem:[%s3866_s3 + $0xc4] ss:$8 sps:$4 sm:$0xff]  }
  0x80   :  { %1571 = vmatprep.subr.bf16.mxu0 %v2593_v27  ;;  %1540 = vmatprep.subr.bf16.mxu1 %v2668_v5  ;;  %v2686_v27 = vld [vmem:[%s3866_s3 + $0x84] ss:$8 sps:$4 sm:$0xff]  }
  0x81   :  { %1541 = vmatpush2.bf16.msra.mxu1 %v2666_v6 }
  0x82   :  { %2257 = vmatmul.mubr.msk.bf16.vlgmr.msra.gmra.mxu0 %vm3135_vm6, %v2256_v23  ;;  %v2672_v23 = vld [vmem:[%s3866_s3 + $0xb0] ss:$8 sps:$4 sm:$0xff]   ;;  %1542 = vmatprep.subr.bf16.mxu1 %v2674_v51 }
  0x83   :  { %2260 = vmatprep.mubr.msk.bf16.mxu0 %vm3135_vm6, %v2259_v25  ;;  %1572 = vmatpush1.bf16.msra.mxu0 %v2591_v7  ;;  %v2677_v25 = vld [vmem:[%s3866_s3 + $0x184] ss:$8 sps:$4 sm:$0xff]   ;;  %v2681_v7 = vld [vmem:[%s3866_s3 + $0x90] ss:$8 sps:$4 sm:$0xff]  }
  0x84   :  { %1573 = vmatprep.subr.bf16.mxu0 %v2596_v29  ;;  %v2684_v29 = vld [vmem:[%s3866_s3 + $0x80] ss:$8 sps:$4 sm:$0xff]  }
  0x85   :  { %1543 = vmatpush2.bf16.msra.mxu1 %v2672_v23 }
  0x86   :  { %1544 = vmatprep.subr.bf16.mxu1 %v2680_v24 }
  0x87   :  { %1574 = vmatpush1.bf16.msra.mxu0 %v2594_v30  ;;  %v2689_v30 = vld [vmem:[%s3866_s3 + $0x274] ss:$8 sps:$4 sm:$0xff]  }
  0x88   :  { %1575 = vmatprep.subr.bf16.mxu0 %v2599_v31 }
  0x89   :  { %1545 = vmatpush2.bf16.msra.mxu1 %v2678_v48 }
  0x8a   :  { %2263 = vmatmul.mubr.msk.bf16.gmra.mxu0 %vm3135_vm6, %v2262_v28  ;;  %v2683_v28 = vld [vmem:[%s3866_s3 + $0x94] ss:$8 sps:$4 sm:$0xff]  }
  0x8b   :  { %1576 = vmatpush1.bf16.msra.mxu0 %v2597_v34  ;;  %1546 = vmatprep.subr.bf16.mxu1 %v2683_v28 }
  0x8c   :  { %1577 = vmatprep.subr.bf16.mxu0 %v2605_v37  ;;  %v3441_v37 = vsub.s32 0, %v2937_v43 }
  0x8d   :  { %1547 = vmatpush2.bf16.msra.mxu1 %v2681_v7 }
  0x8e   :  { %1548 = vmatprep.subr.bf16.mxu1 %v2686_v27  ;;  %v216_v41 = vrot.slane %v211_v38, %v3441_v37 }
  0x8f   :  { %1578 = vmatpush1.bf16.msra.mxu0 %v2603_v39 }
  0x90   :  { %1579 = vmatprep.subr.bf16.mxu0 %v2611_v40 }
  0x91   :  { %1549 = vmatpush2.bf16.msra.mxu1 %v2684_v29 }
  0x92   :  { %1624 = vmatprep.subr.bf16.mxu1 %v2689_v30 }
  0x93   :  { %1580 = vmatpush1.bf16.msra.mxu0 %v2609_v44 }
  0x94   :  { %1581 = vmatprep.subr.bf16.mxu0 %v2617_v45 }
  0x97   :  { %1582 = vmatpush1.bf16.msra.mxu0 %v2615_v49 }
  0x98   :  { %1583 = vmatprep.subr.bf16.mxu0 %v2623_v50 }
  0x9b   :  { %1584 = vmatpush1.bf16.msra.mxu0 %v2621_v55 }
  0x9c   :  { %1585 = vmatprep.subr.bf16.mxu0 %v2629_v56 }
  0x9f   :  { %1586 = vmatpush1.bf16.msra.mxu0 %v2627_v59 }
  0xa0   :  { %1587 = vmatprep.subr.bf16.mxu0 %v2635_v60 }
  0xa3   :  { %1588 = vmatpush2.bf16.msra.mxu0 %v2633_v0 }
  0xa4   :  { %1589 = vmatprep.subr.bf16.mxu0 %v2641_v2 }
  0xa7   :  { %1590 = vmatpush2.bf16.msra.mxu0 %v2639_v4 }
  0xa8   :  { %1591 = vmatprep.subr.bf16.mxu0 %v2647_v9 }
  0xab   :  { %1592 = vmatpush2.bf16.msra.mxu0 %v2645_v11 }
  0xac   :  { %1593 = vmatprep.subr.bf16.mxu0 %v2653_v13 }
  0xaf   :  { %1594 = vmatpush2.bf16.msra.mxu0 %v2651_v14 }
  0xb0   :  { %1595 = vmatprep.subr.bf16.mxu0 %v2659_v15 }
  0xb3   :  { %1596 = vmatpush2.bf16.msra.mxu0 %v2657_v16 }
  0xb4   :  { %1597 = vmatprep.subr.bf16.mxu0 %v2665_v19 }
  0xb7   :  { %1598 = vmatpush2.bf16.msra.mxu0 %v2663_v20 }
  0xb8   :  { %1599 = vmatprep.subr.bf16.mxu0 %v2671_v21 }
  0xbb   :  { %1600 = vmatpush2.bf16.msra.mxu0 %v2669_v22 }
  0xbc   :  { %1601 = vmatprep.subr.bf16.mxu0 %v2677_v25 }
  0xbf   :  { %1602 = vmatpush2.bf16.msra.mxu0 %v2675_v26 }
 0x102   :  { %v737_v31 = vpop.f32.mrf.mxu0 }
 0x103   :  { %v790_v34 = vpop.f32.mrf.mxu1  ;;  %v738_v46 = vadd.f32 %v737_v31, %v216_v41 }
 0x104   :  { %v739_v32 = vpop.f32.mrf.mxu0 }
 0x105   :  { %v792_v39 = vpop.f32.mrf.mxu1  ;;  %v791_v54 = vadd.f32 %v790_v34, %v738_v46  ;;  %v740_v56 = vadd.f32 %v739_v32, %v220_v47 }
 0x106   :  { %v741_v33 = vpop.f32.mrf.mxu0 }
 0x107   :  { %v794_v44 = vpop.f32.mrf.mxu1  ;;  %v742_v55 = vadd.f32 %v741_v33, %v216_v41  ;;  %v793_v0 = vadd.f32 %v792_v39, %v740_v56 }
 0x108   :  { %v743_v35 = vpop.f32.mrf.mxu0 }
 0x109   :  { %v796_v49 = vpop.f32.mrf.mxu1  ;;  %v744_v58 = vadd.f32 %v743_v35, %v220_v47  ;;  %v795_v63 = vadd.f32 %v794_v44, %v742_v55 }
 0x10a   :  { %v747_v36 = vpop.f32.mrf.mxu0 }
 0x10b   :  { %v748_v1 = vadd.f32 %v747_v36, %v216_v41  ;;  %v797_v3 = vadd.f32 %v796_v49, %v744_v58 }
 0x10c   :  { %v749_v40 = vpop.f32.mrf.mxu0  ;;  %v800_v50 = vpop.f32.mrf.mxu1 }
 0x10d   :  { %v750_v9 = vadd.f32 %v749_v40, %v220_v47  ;;  %v801_v16 = vadd.f32 %v800_v50, %v748_v1 }
 0x10e   :  { %v751_v45 = vpop.f32.mrf.mxu0  ;;  %v802_v60 = vpop.f32.mrf.mxu1 }
 0x10f   :  { %v752_v13 = vadd.f32 %v751_v45, %v216_v41  ;;  %v803_v6 = vadd.f32 %v802_v60, %v750_v9 }
 0x110   :  { %v753_v53 = vpop.f32.mrf.mxu0  ;;  %v804_v10 = vpop.f32.mrf.mxu1 }
 0x111   :  { %v754_v18 = vadd.f32 %v753_v53, %v220_v47  ;;  %v805_v25 = vadd.f32 %v804_v10, %v752_v13  ;;  %v2695_v13 = vld [vmem:[%s3866_s3 + $0x254] ss:$8 sps:$4 sm:$0xff]  }
 0x112   :  { %v806_v21 = vpop.f32.mrf.mxu1 }
 0x113   :  { %v807_v27 = vadd.f32 %v806_v21, %v754_v18  ;;  %v2696_v21 = vld [vmem:[%s3866_s3 + $0x240] ss:$8 sps:$4 sm:$0xff]  }
 0x142   :  { %v843_v57 = vpop.f32.mrf.mxu0 }
 0x143   :  { %v844_v59 = vadd.f32 %v843_v57, %v791_v54 }
 0x144   :  { %v845_v62 = vpop.f32.mrf.mxu0 }
 0x145   :  { %v862_v4 = vmax.f32 %v844_v59, 0.0  ;;  %v846_v11 = vadd.f32 %v845_v62, %v793_v0 }
 0x146   :  { %v847_v2 = vpop.f32.mrf.mxu0 }
 0x147   :  { %v848_v8 = vadd.f32 %v847_v2, %v795_v63  ;;  %v894_v19 = vrot.slane %v862_v4, 1  ;;  %v3456_v22 = vmax.f32 %v846_v11, 0.0  ;;  %v870_v45 = vrot.slane %v862_v4, 7  ;;  %v2687_v63 = vld [vmem:[%s3866_s3 + $0x270] ss:$8 sps:$4 sm:$0xff]  }
 0x148   :  { %v849_v12 = vpop.f32.mrf.mxu0  ;;  %v2690_v11 = vld [vmem:[%s3866_s3 + $0x260] ss:$8 sps:$4 sm:$0xff]  }
 0x149   :  { %v3451_v14 = vmax.f32 %v848_v8, 0.0  ;;  %v850_v15 = vadd.f32 %v849_v12, %v797_v3  ;;  %v871_v47 = vrot.slane %v3456_v22, 7  ;;  %v2692_v3 = vld [vmem:[%s3866_s3 + $0x264] ss:$8 sps:$4 sm:$0xff]  }
 0x14a   :  { %v853_v17 = vpop.f32.mrf.mxu0 }
 0x14b   :  { %v896_v20 = vrot.slane %v3451_v14, 1  ;;  %v3454_v5 = vmax.f32 %v850_v15, 0.0  ;;  %v854_v51 = vadd.f32 %v853_v17, %v801_v16  ;;  %v922_v29 = vpack.c.bf16 %v3451_v14, %v862_v4  ;;  %v2693_v17 = vld [vmem:[%s3866_s3 + $0x250] ss:$8 sps:$4 sm:$0xff]  }
 0x14c   :  { %v855_v23 = vpop.f32.mrf.mxu0  ;;  %v872_v46 = vrot.slane %v3451_v14, 7  ;;  %v895_v15 = vrot.slane %v3456_v22, 1 }
 0x14d   :  { %v3460_v26 = vsel %vm86_vm4, %v894_v19, %v896_v20  ;;  %v866_v24 = vmax.f32 %v854_v51, 0.0  ;;  %v856_v48 = vadd.f32 %v855_v23, %v803_v6  ;;  %v923_v7 = vpack.c.bf16 %v3454_v5, %v3456_v22  ;;  %v2701_v51 = vld [vmem:[%s3866_s3 + $0x234] ss:$8 sps:$4 sm:$0xff]   ;;  %v2699_v23 = vld [vmem:[%s3866_s3 + $0x230] ss:$8 sps:$4 sm:$0xff]  }
 0x14e   :  { %v857_v28 = vpop.f32.mrf.mxu0  ;;  %v873_v36 = vrot.slane %v3454_v5, 7  ;;  %v882_v60 = vsel %vm61_vm0, %v870_v45, %v872_v46  ;;  %v897_v12 = vrot.slane %v3454_v5, 1  ;;  %v2698_v5 = vld [vmem:[%s3866_s3 + $0x244] ss:$8 sps:$4 sm:$0xff]   ;;  %v1736_v22 = vld [vmem:[%s3868_s9 + $0xf8] sm:$0xff] }
 0x14f   :  { %v858_v30 = vadd.f32 %v857_v28, %v805_v25  ;;  %v898_v31 = vrot.slane %v866_v24, 1  ;;  %1603 = vmatprep.mubr.bf16.mxu0 %v923_v7  ;;  %v3465_v33 = vmax.f32 %v856_v48, 0.0  ;;  %v874_v10 = vrot.slane %v866_v24, 7  ;;  %v2702_v25 = vld [vmem:[%s3866_s3 + $0x220] ss:$8 sps:$4 sm:$0xff]   ;;  %2391 = vmatprep.subr.mxu0 %v1736_v22 }
 0x150   :  { %v859_v32 = vpop.f32.mrf.mxu0  ;;  %1604 = vmatmul.mubr.bf16.vlgmr.msra.gmra.mxu0 %v922_v29  ;;  %v883_v57 = vsel %vm61_vm0, %v871_v47, %v873_v36  ;;  %v2705_v48 = vld [vmem:[%s3866_s3 + $0x210] ss:$8 sps:$4 sm:$0xff]   ;;  %v2710_v28 = vld [vmem:[%s3866_s3 + $0x204] ss:$8 sps:$4 sm:$0xff]   ;;  %v2708_v7 = vld [vmem:[%s3866_s3 + $0x200] ss:$8 sps:$4 sm:$0xff]  }
 0x151   :  { %v868_v34 = vmax.f32 %v858_v30, 0.0  ;;  %v860_v35 = vadd.f32 %v859_v32, %v807_v27  ;;  %v3470_v38 = vsel %vm86_vm4, %v896_v20, %v898_v31  ;;  %v875_v49 = vrot.slane %v3465_v33, 7  ;;  %v2713_v27 = vld [vmem:[%s3866_s3 + $0x2f4] ss:$8 sps:$4 sm:$0xff]   ;;  %v2711_v29 = vld [vmem:[%s3866_s3 + $0x2f0] ss:$8 sps:$4 sm:$0xff]  }
 0x152   :  { %v2376_v39 = vpack.c.bf16 %v3470_v38, %v3460_v26  ;;  %v899_v9 = vrot.slane %v3465_v33, 1  ;;  %v880_v18 = vsel %vm61_vm0, %v872_v46, %v874_v10  ;;  %v907_v20 = vsel %vm86_vm4, %v895_v15, %v897_v12  ;;  %v2716_v30 = vld [vmem:[%s3866_s3 + $0x2e4] ss:$8 sps:$4 sm:$0xff]   ;;  %v2719_v32 = vld [vmem:[%s3866_s3 + $0x2d4] ss:$8 sps:$4 sm:$0xff]  }
 0x153   :  { %v876_v40 = vrot.slane %v868_v34, 7  ;;  %v900_v41 = vrot.slane %v868_v34, 1  ;;  %v3474_v44 = vmax.f32 %v860_v35, 0.0  ;;  %v924_v56 = vpack.c.bf16 %v868_v34, %v866_v24  ;;  %v2707_v24 = vld [vmem:[%s3866_s3 + $0x214] ss:$8 sps:$4 sm:$0xff]   ;;  %v1734_v38 = vld [vmem:[%s3868_s9 + $0xe8] sm:$0xff] }
 0x154   :  { %v881_v2 = vsel %vm61_vm0, %v873_v36, %v875_v49  ;;  %v905_v16 = vsel %vm86_vm4, %v897_v12, %v899_v9  ;;  %v2717_v34 = vld [vmem:[%s3866_s3 + $0x2d0] ss:$8 sps:$4 sm:$0xff]   ;;  %v2722_v35 = vld [vmem:[%s3866_s3 + $0x2c4] ss:$8 sps:$4 sm:$0xff]   ;;  %v2720_v36 = vld [vmem:[%s3866_s3 + $0x2c0] ss:$8 sps:$4 sm:$0xff]  }
 0x155   :  { %v877_v50 = vrot.slane %v3474_v44, 7  ;;  %v925_v53 = vpack.c.bf16 %v3474_v44, %v3465_v33  ;;  %v884_v54 = vsel %vm61_vm0, %v876_v40, %v870_v45  ;;  %v3486_v55 = vsel %vm86_vm4, %v898_v31, %v900_v41  ;;  %v2714_v31 = vld [vmem:[%s3866_s3 + $0x2e0] ss:$8 sps:$4 sm:$0xff]   ;;  %v2728_v45 = vld [vmem:[%s3866_s3 + $0x2a4] ss:$8 sps:$4 sm:$0xff]   ;;  %v1720_v26 = vld [vmem:[%s3868_s9 + $0x78] sm:$0xff] }
 0x156   :  { %v3501_v0 = vsel %vm86_vm4, %v900_v41, %v894_v19  ;;  %v2364_v1 = vpack.c.bf16 %v882_v60, %v884_v54  ;;  %v878_v14 = vsel %vm61_vm0, %v874_v10, %v876_v40  ;;  %v2373_v6 = vpack.c.bf16 %v905_v16, %v907_v20  ;;  %v2725_v40 = vld [vmem:[%s3866_s3 + $0x2b4] ss:$8 sps:$4 sm:$0xff]   ;;  %v2723_v41 = vld [vmem:[%s3866_s3 + $0x2b0] ss:$8 sps:$4 sm:$0xff]   ;;  %v2726_v46 = vld [vmem:[%s3866_s3 + $0x2a0] ss:$8 sps:$4 sm:$0xff]   ;;  %2392 = vmatpush3.msra.mxu0 %v1720_v26 }
 0x157   :  { %1613 = vmatprep.mubr.bf16.mxu0 %v925_v53  ;;  %v885_v58 = vsel %vm61_vm0, %v877_v50, %v871_v47  ;;  %v879_v59 = vsel %vm61_vm0, %v875_v49, %v877_v50  ;;  %v2382_v4 = vpack.c.bf16 %v3501_v0, %v3486_v55  ;;  %v2370_v19 = vpack.c.bf16 %v878_v14, %v880_v18  ;;  %v2731_v47 = vld [vmem:[%s3866_s3 + $0x294] ss:$8 sps:$4 sm:$0xff]   ;;  %v2729_v49 = vld [vmem:[%s3866_s3 + $0x290] ss:$8 sps:$4 sm:$0xff]   ;;  %v2734_v50 = vld [vmem:[%s3866_s3 + $0x284] ss:$8 sps:$4 sm:$0xff]  }
 0x158   :  { %v2361_v62 = vpack.c.bf16 %v883_v57, %v885_v58  ;;  %1614 = vmatmul.mubr.bf16.gmra.mxu0 %v924_v56  ;;  %v2367_v8 = vpack.c.bf16 %v879_v59, %v881_v2  ;;  %v901_v53 = vrot.slane %v3474_v44, 1  ;;  %v2732_v54 = vld [vmem:[%s3866_s3 + $0x280] ss:$8 sps:$4 sm:$0xff]   ;;  %v1735_v33 = vld [vmem:[%s3868_s9 + $0xf0] sm:$0xff]  ;;  %v1732_v59 = vld [vmem:[%s3868_s9 + $0xd8] sm:$0xff] }
 0x159   :  { %2393 = vmatprep.subr.mxu0 %v1735_v33  ;;  %v1733_v44 = vld [vmem:[%s3868_s9 + $0xe0] sm:$0xff]  ;;  %v1716_v60 = vld [vmem:[%s3868_s9 + $0x58] sm:$0xff]  ;;  %v1730_v0 = vld [vmem:[%s3868_s9 + $0xc8] sm:$0xff] }
 0x15a   :  { %2362 = vmatprep.mubr.msk.bf16.mxu1 %vm2996_vm3, %v2361_v62  ;;  %v903_v56 = vsel %vm86_vm4, %v899_v9, %v901_v53  ;;  %v909_v57 = vsel %vm86_vm4, %v901_v53, %v895_v15  ;;  %2394 = vmatpush3.msra.mxu0 %v1719_v52  ;;  %v1717_v55 = vld [vmem:[%s3868_s9 + $0x60] sm:$0xff]  ;;  %v1731_v62 = vld [vmem:[%s3868_s9 + $0xd0] sm:$0xff]  ;;  %v1710_v12 = vld [vmem:[%s3868_s9 + $0x28] sm:$0xff] }
 0x15b   :  { %2365 = vmatmul.mubr.msk.bf16.vlgmr.msra.gmra.mxu1 %vm2996_vm3, %v2364_v1  ;;  %v2379_v58 = vpack.c.bf16 %v909_v57, %v903_v56  ;;  %2395 = vmatprep.subr.mxu0 %v1734_v38  ;;  %v1714_v1 = vld [vmem:[%s3868_s9 + $0x48] sm:$0xff]  ;;  %v1729_v2 = vld [vmem:[%s3868_s9 + $0xc0] sm:$0xff]  ;;  %v1727_v9 = vld [vmem:[%s3868_s9 + $0xb0] sm:$0xff] }
 0x15c   :  { %1625 = vmatpush1.bf16.msra.mxu1 %v2687_v63  ;;  %2368 = vmatprep.mubr.msk.bf16.mxu1 %vm2996_vm3, %v2367_v8  ;;  %v1715_v63 = vld [vmem:[%s3868_s9 + $0x50] sm:$0xff]  ;;  %v1712_v8 = vld [vmem:[%s3868_s9 + $0x38] sm:$0xff]  ;;  %v1709_v14 = vld [vmem:[%s3868_s9 + $0x20] sm:$0xff] }
 0x15d   :  { %1626 = vmatprep.subr.bf16.mxu1 %v2692_v3  ;;  %v1713_v3 = vld [vmem:[%s3868_s9 + $0x40] sm:$0xff]  ;;  %v1711_v10 = vld [vmem:[%s3868_s9 + $0x30] sm:$0xff]  ;;  %v1724_v15 = vld [vmem:[%s3868_s9 + $0x98] sm:$0xff] }
 0x15e   :  { %v1708_v16 = vld [vmem:[%s3868_s9 + $0x18] sm:$0xff]  ;;  %v1707_v18 = vld [vmem:[%s3868_s9 + $0x10] sm:$0xff]  ;;  %v1706_v20 = vld [vmem:[%s3868_s9 + $0x8] sm:$0xff] }
 0x160   :  { %1627 = vmatpush1.bf16.msra.mxu1 %v2690_v11  ;;  %v1726_v11 = vld [vmem:[%s3868_s9 + $0xa8] sm:$0xff] }
 0x161   :  { %1628 = vmatprep.subr.bf16.mxu1 %v2695_v13  ;;  %v1725_v13 = vld [vmem:[%s3868_s9 + $0xa0] sm:$0xff] }
 0x163   :  { %2371 = vmatmul.mubr.msk.bf16.gmra.mxu1 %vm2996_vm3, %v2370_v19  ;;  %v1722_v19 = vld [vmem:[%s3868_s9 + $0x88] sm:$0xff] }
 0x164   :  { %1629 = vmatpush1.bf16.msra.mxu1 %v2693_v17  ;;  %2374 = vmatprep.mubr.msk.bf16.mxu1 %vm3135_vm6, %v2373_v6  ;;  %v1723_v17 = vld [vmem:[%s3868_s9 + $0x90] sm:$0xff]  ;;  %v1705_v6 = vld [vmem:[%s3868_s9] sm:$0xff] }
 0x165   :  { %1630 = vmatprep.subr.bf16.mxu1 %v2698_v5  ;;  %v1721_v5 = vld [vmem:[%s3868_s9 + $0x80] sm:$0xff] }
 0x168   :  { %1631 = vmatpush1.bf16.msra.mxu1 %v2696_v21  ;;  %v2748_v21 = vmov 0.0  }
 0x169   :  { %1632 = vmatprep.subr.bf16.mxu1 %v2701_v51  ;;  %v1818_v51 = vld [vmem:[%s3869_s5 + $0x8] sm:$0xff] }
 0x16c   :  { %1633 = vmatpush1.bf16.msra.mxu1 %v2699_v23  ;;  %v1817_v23 = vld [vmem:[%s3869_s5] sm:$0xff] }
 0x16d   :  { %1634 = vmatprep.subr.bf16.mxu1 %v2704_v61 }
 0x170   :  { %1635 = vmatpush1.bf16.msra.mxu1 %v2702_v25 }
 0x171   :  { %1636 = vmatprep.subr.bf16.mxu1 %v2707_v24 }
 0x174   :  { %1637 = vmatpush1.bf16.msra.mxu1 %v2705_v48 }
 0x175   :  { %1638 = vmatprep.subr.bf16.mxu1 %v2710_v28 }
 0x178   :  { %1639 = vmatpush1.bf16.msra.mxu1 %v2708_v7 }
 0x179   :  { %1640 = vmatprep.subr.bf16.mxu1 %v2713_v27 }
 0x17c   :  { %1641 = vmatpush2.bf16.msra.mxu1 %v2711_v29 }
 0x17d   :  { %1642 = vmatprep.subr.bf16.mxu1 %v2716_v30 }
 0x180   :  { %1643 = vmatpush2.bf16.msra.mxu1 %v2714_v31  ;;  %v1026_v31 = vld [vmem:[%s3870_s4] sm:$0x3] }
 0x181   :  { %1644 = vmatprep.subr.bf16.mxu1 %v2719_v32 }
 0x184   :  { %1645 = vmatpush2.bf16.msra.mxu1 %v2717_v34  ;;  %v1031_v34 = vrot.slane %v1026_v31, %v3441_v37 }
 0x185   :  { %1646 = vmatprep.subr.bf16.mxu1 %v2722_v35 }
 0x188   :  { %1647 = vmatpush2.bf16.msra.mxu1 %v2720_v36  ;;  %v1035_v36 = vrot.slane %v1026_v31, %v3448_v42 }
 0x189   :  { %1648 = vmatprep.subr.bf16.mxu1 %v2725_v40 }
 0x18c   :  { %1649 = vmatpush2.bf16.msra.mxu1 %v2723_v41 }
 0x18d   :  { %1650 = vmatprep.subr.bf16.mxu1 %v2728_v45 }
 0x190   :  { %1651 = vmatpush2.bf16.msra.mxu1 %v2726_v46 }
 0x191   :  { %1652 = vmatprep.subr.bf16.mxu1 %v2731_v47 }
 0x194   :  { %1653 = vmatpush2.bf16.msra.mxu1 %v2729_v49 }
 0x195   :  { %1654 = vmatprep.subr.bf16.mxu1 %v2734_v50 }
 0x198   :  { %1655 = vmatpush2.bf16.msra.mxu1 %v2732_v54 }
 0x199   :  { %2431 = vmatprep.subr.mxu1 %v2748_v21 }
 0x19b   :  { %2377 = vmatmul.mubr.msk.bf16.vlgmr.msra.gmra.mxu1 %vm3135_vm6, %v2376_v39  ;;  %v1718_v39 = vld [vmem:[%s3868_s9 + $0x68] sm:$0xff] }
 0x19c   :  { %2380 = vmatprep.mubr.msk.bf16.mxu1 %vm3135_vm6, %v2379_v58  ;;  %2396 = vmatpush3.msra.mxu0 %v1718_v39 }
 0x19d   :  { %2397 = vmatprep.subr.mxu0 %v1733_v44  ;;  %2432 = vmatpush3.msra.mxu1 %v1818_v51 }
 0x19e   :  { %2398 = vmatpush3.msra.mxu0 %v1717_v55  ;;  %2433 = vmatprep.subr.mxu1 %v2748_v21 }
 0x19f   :  { %2399 = vmatprep.subr.mxu0 %v1732_v59  ;;  %2434 = vmatpush3.msra.mxu1 %v1817_v23 }
 0x1a0   :  { %2400 = vmatpush3.msra.mxu0 %v1716_v60  ;;  %2438 = vmatprep.subr.mxu1 %v2748_v21 }
 0x1a1   :  { %2401 = vmatprep.subr.mxu0 %v1731_v62 }
 0x1a2   :  { %2402 = vmatpush3.msra.mxu0 %v1715_v63 }
 0x1a3   :  { %2383 = vmatmul.mubr.msk.bf16.gmra.mxu1 %vm3135_vm6, %v2382_v4  ;;  %2403 = vmatprep.subr.mxu0 %v1730_v0  ;;  %v1728_v4 = vld [vmem:[%s3868_s9 + $0xb8] sm:$0xff] }
 0x1a4   :  { %2404 = vmatpush3.msra.mxu0 %v1714_v1  ;;  %2435 = vmatprep.mubr.msk.f32.mxu1 %vm2749_vm8, %v2748_v21 }
 0x1a5   :  { %2405 = vmatprep.subr.mxu0 %v1729_v2 }
 0x1a6   :  { %2406 = vmatpush3.msra.mxu0 %v1713_v3 }
 0x1a7   :  { %2407 = vmatprep.subr.mxu0 %v1728_v4 }
 0x1a8   :  { %2408 = vmatpush3.msra.mxu0 %v1712_v8 }
 0x1a9   :  { %2409 = vmatprep.subr.mxu0 %v1727_v9 }
 0x1aa   :  { %2410 = vmatpush3.msra.mxu0 %v1711_v10 }
 0x1ab   :  { %2411 = vmatprep.subr.mxu0 %v1726_v11 }
 0x1ac   :  { %2412 = vmatpush3.msra.mxu0 %v1710_v12 }
 0x1ad   :  { %2413 = vmatprep.subr.mxu0 %v1725_v13 }
 0x1ae   :  { %2414 = vmatpush3.msra.mxu0 %v1709_v14 }
 0x1af   :  { %2415 = vmatprep.subr.mxu0 %v1724_v15 }
 0x1b0   :  { %2416 = vmatpush3.msra.mxu0 %v1708_v16 }
 0x1b1   :  { %2417 = vmatprep.subr.mxu0 %v1723_v17 }
 0x1b2   :  { %2418 = vmatpush3.msra.mxu0 %v1707_v18 }
 0x1b3   :  { %2419 = vmatprep.subr.mxu0 %v1722_v19 }
 0x1b4   :  { %2420 = vmatpush3.msra.mxu0 %v1706_v20 }
 0x1b5   :  { %2421 = vmatprep.subr.mxu0 %v1721_v5 }
 0x1b6   :  { %2422 = vmatpush3.msra.mxu0 %v1705_v6 }
 0x210   :  { %v1605_v28 = vpop.f32.mrf.mxu0 }
 0x212   :  { %v1607_v27 = vpop.f32.mrf.mxu0 }
 0x214   :  { %v1609_v30 = vpop.f32.mrf.mxu0 }
 0x216   :  { %v1611_v35 = vpop.f32.mrf.mxu0 }
 0x218   :  { %v1615_v46 = vpop.f32.mrf.mxu0 }
 0x21a   :  { %v1617_v57 = vpop.f32.mrf.mxu0 }
 0x21b   :  { %v1552_v61 = vpop.f32.mrf.mxu1 }
 0x21c   :  { %v1553_v41 = vadd.f32 %v1552_v61, %v1031_v34  ;;  %v1619_v62 = vpop.f32.mrf.mxu0 }
 0x21d   :  { %v1554_v25 = vpop.f32.mrf.mxu1 }
 0x21e   :  { %v1555_v49 = vadd.f32 %v1554_v25, %v1035_v36  ;;  %v1606_v54 = vadd.f32 %v1605_v28, %v1553_v41  ;;  %v1621_v11 = vpop.f32.mrf.mxu0 }
 0x21f   :  { %v1556_v24 = vpop.f32.mrf.mxu1 }
 0x220   :  { %v1557_v45 = vadd.f32 %v1556_v24, %v1031_v34  ;;  %v1608_v26 = vadd.f32 %v1607_v27, %v1555_v49 }
 0x221   :  { %v1558_v48 = vpop.f32.mrf.mxu1 }
 0x222   :  { %v1559_v50 = vadd.f32 %v1558_v48, %v1035_v36  ;;  %v1610_v56 = vadd.f32 %v1609_v30, %v1557_v45 }
 0x223   :  { %v1562_v7 = vpop.f32.mrf.mxu1 }
 0x224   :  { %v1612_v52 = vadd.f32 %v1611_v35, %v1559_v50  ;;  %v1563_v38 = vadd.f32 %v1562_v7, %v1031_v34 }
 0x225   :  { %v1564_v29 = vpop.f32.mrf.mxu1 }
 0x226   :  { %v1565_v63 = vadd.f32 %v1564_v29, %v1035_v36  ;;  %v1616_v9 = vadd.f32 %v1615_v46, %v1563_v38 }
 0x227   :  { %v1566_v32 = vpop.f32.mrf.mxu1 }
 0x228   :  { %v1567_v44 = vadd.f32 %v1566_v32, %v1031_v34  ;;  %v1618_v12 = vadd.f32 %v1617_v57, %v1565_v63  ;;  %v1994_v63 = vld [vmem:[%s3873_s10 + $0x8] sm:$0xff] }
 0x229   :  { %v1568_v40 = vpop.f32.mrf.mxu1 }
 0x22a   :  { %v1569_v1 = vadd.f32 %v1568_v40, %v1035_v36  ;;  %v1620_v10 = vadd.f32 %v1619_v62, %v1567_v44  ;;  %v1995_v62 = vld [vmem:[%s3873_s10 + $0x10] sm:$0xff] }
 0x22c   :  { %v1622_v17 = vadd.f32 %v1621_v11, %v1569_v1  ;;  %v2750_v11 = vmov 1966171168  }
 0x25b   :  { %v1658_v47 = vpop.f32.mrf.mxu1 }
 0x25c   :  { %v3753_v22 = vadd.f32 %v1658_v47, %v1606_v54 }
 0x25d   :  { %v1660_v53 = vpop.f32.mrf.mxu1 }
 0x25e   :  { %v3757_v55 = vadd.f32 %v1660_v53, %v1608_v26  ;;  %v2384_v26 = vld [vmem:[%s3872_s6] ss:$0 sm:$0xff] }
 0x25f   :  { %v1662_v58 = vpop.f32.mrf.mxu1 }
 0x260   :  { %v3755_v33 = vadd.f32 %v1662_v58, %v1610_v56  ;;  %v1901_v58 = vld [vmem:[%s3871_s7] sm:$0xf] }
 0x261   :  { %v1664_v39 = vpop.f32.mrf.mxu1 }
 0x262   :  { %v1677_v59 = vadd.f32 %v3755_v33, %v3753_v22  ;;  %v3761_v60 = vadd.f32 %v1664_v39, %v1612_v52 }
 0x263   :  { %v1668_v0 = vpop.f32.mrf.mxu1 }
 0x264   :  { %v1684_v2 = vadd.f32 %v3761_v60, %v3757_v55  ;;  %v1678_v3 = vrot.slane %v1677_v59, 4  ;;  %v3765_v15 = vadd.f32 %v1668_v0, %v1616_v9  ;;  %v1993_v0 = vld [vmem:[%s3873_s10] sm:$0xff] }
 0x265   :  { %v1670_v4 = vpop.f32.mrf.mxu1 }
 0x266   :  { %v1685_v8 = vrot.slane %v1684_v2, 4  ;;  %v1679_v18 = vadd.f32 %v1678_v3, %v1677_v59  ;;  %v3769_v20 = vadd.f32 %v1670_v4, %v1618_v12  ;;  %v1996_v59 = vld [vmem:[%s3873_s10 + $0x18] sm:$0xff]  ;;  %v2075_v12 = vunpack.c.l.s4 %v2750_v11 }
 0x267   :  { %v1672_v13 = vpop.f32.mrf.mxu1 }
 0x268   :  { %v1686_v14 = vadd.f32 %v1685_v8, %v1684_v2  ;;  %v3767_v16 = vadd.f32 %v1672_v13, %v1620_v10  ;;  %v1680_v25 = vrot.slane %v1679_v18, 2  ;;  %v2076_v13 = vunpack.c.0.s8 %v2075_v12 }
 0x269   :  { %v1674_v19 = vpop.f32.mrf.mxu1 }
 0x26a   :  { %v1691_v5 = vadd.f32 %v3767_v16, %v3765_v15  ;;  %v3773_v6 = vadd.f32 %v1674_v19, %v1622_v17  ;;  %v1687_v51 = vrot.slane %v1686_v14, 2  ;;  %v1681_v29 = vadd.f32 %v1680_v25, %v1679_v18 }
 0x26b   :  { %v2079_v17 = vsub.s32 %v2076_v13, %v2937_v43 }
 0x26c   :  { %v1692_v23 = vrot.slane %v1691_v5, 4  ;;  %v1698_v61 = vadd.f32 %v3773_v6, %v3769_v20  ;;  %v1688_v28 = vadd.f32 %v1687_v51, %v1686_v14  ;;  %v1682_v36 = vrot.slane %v1681_v29, 1 }
 0x26e   :  { %v1693_v24 = vadd.f32 %v1692_v23, %v1691_v5  ;;  %v1699_v48 = vrot.slane %v1698_v61, 4  ;;  %v1689_v35 = vrot.slane %v1688_v28, 1  ;;  %v1683_v47 = vadd.f32 %v1682_v36, %v1681_v29 }
 0x270   :  { %v1694_v7 = vrot.slane %v1693_v24, 2  ;;  %v1700_v27 = vadd.f32 %v1699_v48, %v1698_v61  ;;  %v1690_v45 = vadd.f32 %v1689_v35, %v1688_v28  ;;  %v2744_v35 = vld [vmem:[%s3865_s0 + $0x28] sm:$0xff] }
 0x272   :  { %v1695_v30 = vadd.f32 %v1694_v7, %v1693_v24  ;;  %v1701_v31 = vrot.slane %v1700_v27, 2 }
 0x274   :  { %v1696_v32 = vrot.slane %v1695_v30, 1  ;;  %v1702_v34 = vadd.f32 %v1701_v31, %v1700_v27 }
 0x276   :  { %v1703_v40 = vrot.slane %v1702_v34, 1  ;;  %v1697_v41 = vadd.f32 %v1696_v32, %v1695_v30 }
 0x278   :  { %v1704_v46 = vadd.f32 %v1703_v40, %v1702_v34  ;;  %v1742_v50 = vsel %vm1741_vm7, %v1697_v41, %v1683_v47  ;;  %v2745_v40 = vld [vmem:[%s3865_s0 + $0x30] sm:$0xff] }
 0x27a   :  { %v1743_v49 = vsel %vm1741_vm7, %v1704_v46, %v1690_v45  ;;  %v2746_v45 = vld [vmem:[%s3865_s0 + $0x38] sm:$0xff] }
 0x27b   :  { %1810 = vmatprep.mubr.f32.mxu0 %v1743_v49 }
 0x27c   :  { %1811 = vmatmul.mubr.f32.vlgmr.msra.gmra.mxu0 %v1742_v50 }
 0x33c   :  { %v2423_v53 = vpop.f32.mrf.mxu0 }
 0x33e   :  { %v2424_v54 = vpop.f32.mrf.mxu0 }
 0x33f   :  { %v2425_v56 = vadd.f32 %v2424_v54, %v2423_v53 }
 0x341   :  { %v1816_v57 = vmul.f32 0.00390625, %v2425_v56 }
 0x343   :  { %2436 = vmatmul.mubr.msk.f32.vlgmr.msra.gmra.mxu1 %vm1826_vm9, %v1816_v57 }
 0x344   :  { %2440 = vmatprep.mubr.msk.f32.mxu1 %vm2749_vm8, %v2748_v21  ;;  %2439 = vmatpush3.msk.msra.mxu1 %vm1913_vm10, %v1901_v58 }
 0x345   :  { %2028 = vmatprep.subr.mxu1 %v1996_v59 }
 0x403   :  { %v1896_v52 = vpop.f32.mrf.mxu1 }
 0x404   :  { %v1897_v38 = vadd.f32 %v2384_v26, %v1896_v52 }
 0x405   :  { %v2437_v39 = vpop.f32.mrf.mxu1 }
 0x406   :  { %v1900_v44 = vmax.f32 %v1897_v38, 0.0 }
 0x408   :  { %2441 = vmatmul.mubr.msk.f32.vlgmr.msra.gmra.mxu1 %vm1909_vm11, %v1900_v44 }
 0x409   :  { %2064 = vmatprep.mubr.f32.mxu1 %v2748_v21  ;;  %2029 = vmatpush1.msra.mxu1 %v1995_v62  ;;  %v2386_v21 = vld [vmem:[%s3874_s8] ss:$0 sm:$0xff] }
 0x40a   :  { %2030 = vmatprep.subr.mxu1 %v1994_v63 }
 0x40b   :  { %2031 = vmatpush1.msra.mxu1 %v1993_v0 }
 0x4c8   :  { %v1983_v1 = vpop.f32.mrf.mxu1 }
 0x4c9   :  { %v1984_v2 = vadd.f32 %v2386_v21, %v1983_v1 }
 0x4ca   :  { %v2442_v3 = vpop.f32.mrf.mxu1 }
 0x4cb   :  { %v2389_v4 = vmul.f32 -1.442695, %v1984_v2 }
 0x4cd   :  { %2735 = vpow2.f32 %v2389_v4 }
 0x4da   :  { %v2736_v8 = vpop.eup %2735 }
 0x4db   :  { %v1990_v9 = vadd.f32 1.0, %v2736_v8 }
 0x4dd   :  { %2737 = vrcp.f32 %v1990_v9 }
 0x4ea   :  { %v2738_v10 = vpop.eup %2737 }
 0x4eb   :  { %2390 = vmatmul.mubr.msk.f32.vlgmr.msra.gmra.mxu1 %vm1826_vm9, %v2738_v10 }
 0x5ab   :  { %v2066_v14 = vpop.f32.mrf.mxu1 }
 0x5ad   :  { %v2068_v18 = vpop.f32.mrf.mxu1 }
 0x5ae   :  { %v2073_v19 = vcombine.low %v2066_v14, %v2068_v18 }
 0x5b0   :  { %v2080_v5 = vrot.slane %v2073_v19, %v2079_v17 }
 0x5b2   :  { %v2081_v51 = vcombine.high %v2080_v5, %v2080_v5  ;;  %v2088_v23 = vrot.slane %v2080_v5, %v2079_v17 }
 0x5b4   :  { %v2095_v61 = vrot.slane %v2081_v51, %v2079_v17  ;;  %v2099_v25 = vrot.slane %v2088_v23, %v3441_v37  ;;  %v2103_v24 = vrot.slane %v2088_v23, %v3448_v42 }
 0x5b6   :  { %v2107_v48 = vrot.slane %v2095_v61, %v3441_v37  ;;  %v2111_v28 = vrot.slane %v2095_v61, %v3448_v42  ;;  %v2116_v7 = vmul.f32 %v2099_v25, %v3753_v22  ;;  %v2117_v27 = vmul.f32 %v2103_v24, %v3757_v55  ;;  %v2739_v37 = vld [vmem:[%s3865_s0] sm:$0xff]  ;;  %v2740_v22 = vld [vmem:[%s3865_s0 + $0x8] sm:$0xff]  ;;  %v2741_v55 = vld [vmem:[%s3865_s0 + $0x10] sm:$0xff] }
 0x5b7   :  { %v2118_v43 = vmul.f32 %v2099_v25, %v3755_v33  ;;  %v2119_v29 = vmul.f32 %v2103_v24, %v3761_v60 }
 0x5b8   :  { %v2120_v30 = vmul.f32 %v2107_v48, %v3765_v15  ;;  %v2121_v31 = vmul.f32 %v2111_v28, %v3769_v20  ;;  %v2122_v32 = vmul.f32 %v2107_v48, %v3767_v16  ;;  %v2123_v34 = vmul.f32 %v2111_v28, %v3773_v6  ;;  %v2742_v15 = vld [vmem:[%s3865_s0 + $0x18] sm:$0xff]  ;;  %v2743_v20 = vld [vmem:[%s3865_s0 + $0x20] sm:$0xff] }
 0x5b9   :  { %v2124_v42 = vadd.f32 %v2739_v37, %v2116_v7  ;;  %v2125_v33 = vadd.f32 %v2740_v22, %v2117_v27  ;;  %v2126_v60 = vadd.f32 %v2741_v55, %v2118_v43  ;;  %v2127_v16 = vadd.f32 %v2742_v15, %v2119_v29 }
 0x5ba   :  { %v2128_v6 = vadd.f32 %v2743_v20, %v2120_v30  ;;  %v2129_v36 = vadd.f32 %v2744_v35, %v2121_v31  ;;  %v2130_v41 = vadd.f32 %v2745_v40, %v2122_v32  ;;  %v2131_v46 = vadd.f32 %v2746_v45, %v2123_v34 }
 0x5bb   :  { %2132 = vst [vmem:[%s3875_s11] sm:$0xff] %v2124_v42  ;;  %2133 = vst [vmem:[%s3875_s11 + $0x8] sm:$0xff] %v2125_v33 }
 0x5bc   :  { %2134 = vst [vmem:[%s3875_s11 + $0x10] sm:$0xff] %v2126_v60  ;;  %2135 = vst [vmem:[%s3875_s11 + $0x18] sm:$0xff] %v2127_v16 }
 0x5bd   :  { %2136 = vst [vmem:[%s3875_s11 + $0x20] sm:$0xff] %v2128_v6  ;;  %2137 = vst [vmem:[%s3875_s11 + $0x28] sm:$0xff] %v2129_v36 }
 0x5be   :  { %2138 = vst [vmem:[%s3875_s11 + $0x30] sm:$0xff] %v2130_v41  ;;  %2139 = vst [vmem:[%s3875_s11 + $0x38] sm:$0xff] %v2131_v46 }

</bundles_post_ra>
